<compile_context>
chip_gen: v6e
topology: v6e:2x2x1
jax: 0.10.0
libtpu: 0.0.40
codegen_flags: <defaults>
</compile_context>

<pallas_src>
import functools

import jax
import jax.numpy as jnp
from jax.experimental import pallas as pl
from jax.experimental.pallas import tpu as pltpu


def _round_up(v, m):
    return ((v + m - 1) // m) * m


# ----------------------------- Pallas kernel --------------------------------
def _bu_gcn_group_kernel(a_ref, x_ref, member_ref, pool_ref, rsel_ref, invc_ref,
                         w1_ref, b1_ref, w2a_ref, w2b_ref, b2_ref, out_ref):
    """One grid step == one group of GB graphs packed block-diagonally."""
    a = a_ref[...]                                   # (M, M)  bf16 block-diag BU-normalized adjacency
    x = x_ref[...]                                   # (M, Fp) bf16 node features (x1), M = GB*Ng

    # ---- GCNConv1: h1 = A_hat @ (x @ W1) + b1   (== x2, pre-ReLU) ----
    xw1 = jnp.dot(x, w1_ref[...], preferred_element_type=jnp.float32)        # (M, Hp)
    h1 = jnp.dot(a, xw1.astype(jnp.bfloat16),
                 preferred_element_type=jnp.float32) + b1_ref[...]           # (M, Hp) f32

    # ---- root_extend #1 folded into conv2's GEMM ----
    # relu(concat([h1, x1_root])) @ W2 == relu(h1) @ W2a + relu(x1_root) @ W2b.
    # Root rows (first node of each graph) picked with an exact bf16 0/1 matmul.
    x_roots = jnp.dot(rsel_ref[...], x, preferred_element_type=jnp.float32)  # (GB, Fp)
    x_roots = jnp.maximum(x_roots, 0.0).astype(jnp.bfloat16)                 # relu exact in bf16
    v = jnp.dot(x_roots, w2b_ref[...], preferred_element_type=jnp.float32)   # (GB, Op)
    # broadcast each graph's root term back to that graph's node rows
    vb = jnp.dot(member_ref[...], v.astype(jnp.bfloat16),
                 preferred_element_type=jnp.float32)                         # (M, Op)

    h1_relu = jnp.maximum(h1, 0.0)                                           # f32 VPU (v5e-safe)
    # TODO(synk): F.dropout(training=True) omitted -- inference semantics (identity).
    xw2 = jnp.dot(h1_relu.astype(jnp.bfloat16), w2a_ref[...],
                  preferred_element_type=jnp.float32) + vb                   # (M, Op)

    # ---- GCNConv2 + ReLU ----
    h2 = jnp.dot(a, xw2.astype(jnp.bfloat16),
                 preferred_element_type=jnp.float32) + b2_ref[...]
    h2 = jnp.maximum(h2, 0.0)                                                # (M, Op) f32

    # ---- scatter_mean: bf16 0/1-mask matmul + exact f32 1/count scale ----
    pooled = jnp.dot(pool_ref[...], h2.astype(jnp.bfloat16),
                     preferred_element_type=jnp.float32) * invc_ref[...]     # (GB, Op)

    # ---- root_extend #2 pooled == h1[root]: bf16 0/1 row pick of h1 ----
    h1_roots = jnp.dot(rsel_ref[...], h1.astype(jnp.bfloat16),
                       preferred_element_type=jnp.float32)                   # (GB, Hp)

    # fused lane-dense output block: [:Op] = mean(relu(conv2)), [Op:] = x2[root]
    op = pooled.shape[1]
    out_ref[:, :op] = pooled
    out_ref[:, op:] = h1_roots


# ------------------------------ wrapper (plain JAX, jit-able) ----------------
def bu_rumor_gcn(x, edge_index, batch, params, num_graphs, max_nodes_per_graph,
                 group_rows=256):
    """Forward pass of BUrumorGCN. Returns (B, out_feats + hid_feats), float32.

    `num_graphs`, `max_nodes_per_graph` and `group_rows` must be static Python
    ints (jit static args).  Assumes (as PyG batching does) that `batch` is
    sorted ascending, i.e. nodes are grouped per graph with the graph's root
    being its first node (matching the torch module's `x1[index][0]`).
    """
    w1, b1, w2, b2 = params
    n, fin = x.shape
    hid = w1.shape[1]
    outf = w2.shape[1]

    # padded lane-dense feature dims; per-graph node count rounded to sublanes
    fp = _round_up(fin, 128)
    hp = _round_up(hid, 128)
    op = _round_up(outf, 128)
    ng = _round_up(max(int(max_nodes_per_graph), 1), 8)

    # graphs per group sized so the group slab has ~group_rows MXU rows
    gb = max(1, min(int(group_rows) // ng, int(num_graphs)))
    num_groups = -(-int(num_graphs) // gb)
    g_total = num_groups * gb
    m = gb * ng                                         # rows per group slab

    counts = jnp.zeros((num_graphs,), jnp.int32).at[batch].add(1)
    offsets = jnp.concatenate(
        [jnp.zeros((1,), jnp.int32), jnp.cumsum(counts)[:-1].astype(jnp.int32)])
    local = jnp.arange(n, dtype=jnp.int32) - offsets[batch]
    grp = batch // gb
    row = (batch % gb) * ng + local

    # ---- stacked per-group node features, zero padded, bf16 MXU operands ----
    x_pad = jnp.pad(x.astype(jnp.float32), ((0, 0), (0, fp - fin)))
    xb = jnp.zeros((num_groups, m, fp), jnp.float32).at[grp, row].set(x_pad)
    xb = xb.astype(jnp.bfloat16)

    # ---- block-diagonal normalized adjacency of REVERSED edges (bottom-up) ----
    src = edge_index[1]                        # BU: swap direction
    dst = edge_index[0]
    sl = jnp.arange(n, dtype=edge_index.dtype)
    rows = jnp.concatenate([src, sl])          # message sources (incl. self loops)
    cols = jnp.concatenate([dst, sl])          # message targets
    ew = jnp.ones(rows.shape[0], jnp.float32)
    deg = jnp.zeros((n,), jnp.float32).at[cols].add(ew)
    dis = jnp.where(deg > 0, jax.lax.rsqrt(deg), 0.0)
    norm = dis[rows] * ew * dis[cols]
    gcol = batch[cols]                         # edges never cross graphs
    ggrp = gcol // gb
    r_tgt = (gcol % gb) * ng + (cols - offsets[gcol])
    r_src = (gcol % gb) * ng + (rows - offsets[gcol])
    ab = jnp.zeros((num_groups, m, m), jnp.float32).at[ggrp, r_tgt, r_src].add(norm)
    ab = ab.astype(jnp.bfloat16)

    # ---- readout / broadcast masks (0/1, exact in bf16) + f32 inverse counts ----
    counts_g = jnp.pad(counts, (0, g_total - num_graphs)).reshape(num_groups, gb)
    eye = jnp.eye(gb, dtype=jnp.float32)
    valid = (jnp.arange(ng)[None, None, :] < counts_g[:, :, None]).astype(jnp.float32)
    pool = (eye[None, :, :, None] * valid[:, :, None, :]).reshape(num_groups, gb, m)
    pool = pool.astype(jnp.bfloat16)                                   # (G, GB, M)
    root_onehot = (jnp.arange(ng) == 0).astype(jnp.float32)
    rsel = (eye[:, :, None] * root_onehot[None, None, :]).reshape(1, gb, m)
    rsel = rsel.astype(jnp.bfloat16)                                   # (1, GB, M)
    member = jnp.repeat(eye, ng, axis=0).reshape(1, m, gb).astype(jnp.bfloat16)
    invc = (jnp.where(counts_g > 0, 1.0, 0.0)
            / jnp.maximum(counts_g, 1).astype(jnp.float32))
    invc = invc.reshape(num_groups, gb, 1)                             # (G, GB, 1) f32

    # ---- zero-padded weights (bf16 MXU operands) and f32 biases ----
    w1p = jnp.zeros((fp, hp), jnp.float32).at[:fin, :hid].set(w1).astype(jnp.bfloat16)
    b1p = jnp.zeros((1, hp), jnp.float32).at[0, :hid].set(b1)
    w2a = jnp.zeros((hp, op), jnp.float32).at[:hid, :outf].set(w2[:hid]).astype(jnp.bfloat16)
    w2b = jnp.zeros((fp, op), jnp.float32).at[:fin, :outf].set(w2[hid:hid + fin]).astype(jnp.bfloat16)
    b2p = jnp.zeros((1, op), jnp.float32).at[0, :outf].set(b2)

    operands = (ab, xb, member, pool, rsel, invc, w1p, b1p, w2a, w2b, b2p)

    # advisory cost estimate for the XLA scheduler
    flops = num_groups * 2 * (m * fp * hp + m * m * hp + gb * m * fp + gb * fp * op
                              + m * gb * op + m * hp * op + m * m * op
                              + gb * m * op + gb * m * hp)
    bytes_accessed = (sum(int(o.size) * o.dtype.itemsize for o in operands)
                      + num_groups * gb * (op + hp) * 4)
    cost = pl.CostEstimate(flops=int(flops), transcendentals=0,
                           bytes_accessed=int(bytes_accessed))

    out3d = pl.pallas_call(
        _bu_gcn_group_kernel,
        grid=(num_groups,),
        in_specs=[
            pl.BlockSpec((None, m, m), lambda g: (g, 0, 0)),     # A block of group g
            pl.BlockSpec((None, m, fp), lambda g: (g, 0, 0)),    # x block of group g
            pl.BlockSpec((None, m, gb), lambda g: (0, 0, 0)),    # membership (group-invariant)
            pl.BlockSpec((None, gb, m), lambda g: (g, 0, 0)),    # pool 0/1 mask of group g
            pl.BlockSpec((None, gb, m), lambda g: (0, 0, 0)),    # root select (group-invariant)
            pl.BlockSpec((None, gb, 1), lambda g: (g, 0, 0)),    # 1/count of group g
            pl.BlockSpec((fp, hp), lambda g: (0, 0)),            # W1  (resident across steps)
            pl.BlockSpec((1, hp), lambda g: (0, 0)),             # b1
            pl.BlockSpec((hp, op), lambda g: (0, 0)),            # W2a
            pl.BlockSpec((fp, op), lambda g: (0, 0)),            # W2b
            pl.BlockSpec((1, op), lambda g: (0, 0)),             # b2
        ],
        out_specs=pl.BlockSpec((None, gb, op + hp), lambda g: (g, 0, 0)),
        out_shape=jax.ShapeDtypeStruct((num_groups, gb, op + hp), jnp.float32),
        compiler_params=pltpu.CompilerParams(
            dimension_semantics=("parallel",)),
        cost_estimate=cost,
    )(*operands)

    out2d = out3d.reshape(num_groups * gb, op + hp)[:num_graphs]
    # strip lane padding; column order matches torch.cat((relu(conv2), root_extend), 1)
    return jnp.concatenate([out2d[:, :outf], out2d[:, op:op + hid]], axis=1)


# ------------------------------ pure-JAX f32 reference ---------------------------
def build_norm_adj(edge_index, num_nodes):
    sl = jnp.arange(num_nodes, dtype=edge_index.dtype)
    row = jnp.concatenate([edge_index[0], sl])
    col = jnp.concatenate([edge_index[1], sl])
    ew = jnp.ones(row.shape[0], jnp.float32)
    deg = jnp.zeros(num_nodes, jnp.float32).at[col].add(ew)
    dis = jnp.where(deg > 0, 1.0 / jnp.sqrt(deg), 0.0)
    norm = dis[row] * ew * dis[col]
    return jnp.zeros((num_nodes, num_nodes), jnp.float32).at[col, row].add(norm)


def build_root_and_pool(batch, num_graphs):
    n = batch.shape[0]
    idx = jnp.arange(n, dtype=jnp.int32)
    roots = jnp.full((num_graphs,), n, dtype=jnp.int32).at[batch].min(idx)
    r = jax.nn.one_hot(roots[batch], n, dtype=jnp.float32)
    onehot = (batch[None, :] == jnp.arange(num_graphs)[:, None]).astype(jnp.float32)
    counts = jnp.maximum(onehot.sum(axis=1, keepdims=True), 1.0)
    return r, onehot / counts


def reference(x, edge_index, batch, params, num_graphs):
    w1, b1, w2, b2 = params
    n = x.shape[0]
    rev = jnp.stack([edge_index[1], edge_index[0]], axis=0)
    a_hat = build_norm_adj(rev, n)
    r_mat, p_mat = build_root_and_pool(batch, num_graphs)
    x1 = x.astype(jnp.float32)
    h1 = a_hat @ (x1 @ w1) + b1
    x2 = h1
    re1 = r_mat @ x1
    xc = jnp.maximum(jnp.concatenate([h1, re1], axis=1), 0.0)
    h2 = jnp.maximum(a_hat @ (xc @ w2) + b2, 0.0)
    re2 = r_mat @ x2
    return p_mat @ jnp.concatenate([h2, re2], axis=1)


# ----------------------------------- main ------------------------------------
if __name__ == "__main__":
    key = jax.random.PRNGKey(0)
    k_x, k_w1, k_b1, k_w2, k_b2 = jax.random.split(key, 5)

    # Small synthetic batched rumor trees: 64 graphs x 8 nodes each
    # -> 2 grid steps of 32 block-diagonally packed graphs (256-row MXU slabs).
    in_feats, hid_feats, out_feats = 8, 16, 16
    nodes_per_graph, num_graphs = 8, 64
    n = nodes_per_graph * num_graphs

    x = jax.random.normal(k_x, (n, in_feats), dtype=jnp.float32)
    batch = jnp.repeat(jnp.arange(num_graphs, dtype=jnp.int32), nodes_per_graph)

    # per-graph tree edges (parent -> child), offset per graph
    tree = [(0, 1), (0, 2), (1, 3), (1, 4), (2, 5), (2, 6), (3, 7)]
    src, dst = [], []
    for gid in range(num_graphs):
        off = gid * nodes_per_graph
        for s, d in tree:
            src.append(s + off)
            dst.append(d + off)
    edge_index = jnp.array([src, dst], dtype=jnp.int32)

    # Deterministic parameter init (GCNConv: W without bias + separate bias vec).
    w1 = jax.random.normal(k_w1, (in_feats, hid_feats), jnp.float32) * 0.2
    b1 = jax.random.normal(k_b1, (hid_feats,), jnp.float32) * 0.05
    w2 = jax.random.normal(k_w2, (hid_feats + in_feats, out_feats), jnp.float32) * 0.2
    b2 = jax.random.normal(k_b2, (out_feats,), jnp.float32) * 0.05
    params = (w1, b1, w2, b2)

    fwd = jax.jit(functools.partial(bu_rumor_gcn,
                                    num_graphs=num_graphs,
                                    max_nodes_per_graph=nodes_per_graph,
                                    group_rows=256))
    y = fwd(x, edge_index, batch, params)
    y = jax.block_until_ready(y)

    y_ref = reference(x, edge_index, batch, params, num_graphs)
    assert y.shape == (num_graphs, out_feats + hid_feats), y.shape
    # bf16 MXU operands (f32 accumulation) => looser tolerance than pure-f32.
    assert jnp.allclose(y, y_ref, atol=5e-2, rtol=5e-2), (
        "mismatch vs reference, max abs err = %s" % float(jnp.max(jnp.abs(y - y_ref))))

    print("KERNEL_OK")
</pallas_src>

<mosaic_0001>
module attributes {stable_mosaic.version = 11 : i64} {
  func.func private @main(%arg0: i32) attributes {dimension_semantics = [#tpu.dimension_semantics<core_parallel>], iteration_bounds = array<i64: 2>, tpu.core_type = #tpu.core_type<sc_scalar_subcore>, window_params = []} {
    return
  }
}

module attributes {stable_mosaic.version = 11 : i64} {
  func.func private @main(%arg0: i32) attributes {dimension_semantics = [#tpu.dimension_semantics<core_parallel>], iteration_bounds = array<i64: 2>, tpu.core_type = #tpu.core_type<sc_scalar_subcore>, window_params = []} {
    return
  }
}

module attributes {stable_mosaic.version = 11 : i64} {
  func.func @_bu_gcn_group_kernel(%arg0: i32, %arg1: memref<1x256x256xbf16, #tpu.memory_space<vmem>>, %arg2: memref<1x256x128xbf16, #tpu.memory_space<vmem>>, %arg3: memref<1x256x32xbf16, #tpu.memory_space<vmem>>, %arg4: memref<1x32x256xbf16, #tpu.memory_space<vmem>>, %arg5: memref<1x32x256xbf16, #tpu.memory_space<vmem>>, %arg6: memref<1x32x1xf32, #tpu.memory_space<vmem>>, %arg7: memref<128x128xbf16, #tpu.memory_space<vmem>>, %arg8: memref<1x128xf32, #tpu.memory_space<vmem>>, %arg9: memref<128x128xbf16, #tpu.memory_space<vmem>>, %arg10: memref<128x128xbf16, #tpu.memory_space<vmem>>, %arg11: memref<1x128xf32, #tpu.memory_space<vmem>>, %arg12: memref<1x32x256xf32, #tpu.memory_space<vmem>>) attributes {dimension_semantics = [#tpu.dimension_semantics<parallel>], iteration_bounds = array<i64: 2>, scalar_prefetch = 0 : i64, scratch_operands = 0 : i64, tpu.core_type = #tpu.core_type<tc>, window_params = [{transform_indices = @transform_0, window_bounds = array<i64: 1, 256, 256>}, {transform_indices = @transform_1, window_bounds = array<i64: 1, 256, 128>}, {pipeline_mode = #tpu.pipeline_mode<synchronous>, transform_indices = @transform_2, window_bounds = array<i64: 1, 256, 32>}, {transform_indices = @transform_3, window_bounds = array<i64: 1, 32, 256>}, {pipeline_mode = #tpu.pipeline_mode<synchronous>, transform_indices = @transform_4, window_bounds = array<i64: 1, 32, 256>}, {transform_indices = @transform_5, window_bounds = array<i64: 1, 32, 1>}, {pipeline_mode = #tpu.pipeline_mode<synchronous>, transform_indices = @transform_6, window_bounds = array<i64: 128, 128>}, {pipeline_mode = #tpu.pipeline_mode<synchronous>, transform_indices = @transform_7, window_bounds = array<i64: 1, 128>}, {pipeline_mode = #tpu.pipeline_mode<synchronous>, transform_indices = @transform_8, window_bounds = array<i64: 128, 128>}, {pipeline_mode = #tpu.pipeline_mode<synchronous>, transform_indices = @transform_9, window_bounds = array<i64: 128, 128>}, {pipeline_mode = #tpu.pipeline_mode<synchronous>, transform_indices = @transform_10, window_bounds = array<i64: 1, 128>}, {transform_indices = @transform_11, window_bounds = array<i64: 1, 32, 256>}]} {
    %c0 = arith.constant 0 : index
    %c0_0 = arith.constant 0 : index
    %c0_1 = arith.constant 0 : index
    %0 = vector.load %arg1[%c0, %c0_0, %c0_1] : memref<1x256x256xbf16, #tpu.memory_space<vmem>>, vector<1x256x256xbf16>
    %1 = vector.shape_cast %0 : vector<1x256x256xbf16> to vector<256x256xbf16>
    %c0_2 = arith.constant 0 : index
    %c0_3 = arith.constant 0 : index
    %c0_4 = arith.constant 0 : index
    %2 = vector.load %arg2[%c0_2, %c0_3, %c0_4] : memref<1x256x128xbf16, #tpu.memory_space<vmem>>, vector<1x256x128xbf16>
    %3 = vector.shape_cast %2 : vector<1x256x128xbf16> to vector<256x128xbf16>
    %c0_5 = arith.constant 0 : index
    %c0_6 = arith.constant 0 : index
    %4 = vector.load %arg7[%c0_5, %c0_6] : memref<128x128xbf16, #tpu.memory_space<vmem>>, vector<128x128xbf16>
    %cst = arith.constant dense<0.000000e+00> : vector<256x128xf32>
    %5 = tpu.matmul %3, %4, %cst {dimension_numbers = #tpu.dot_dimension_numbers<[1], [0], [0], [1], [0, 0, 1, 1], [], []>} : vector<256x128xbf16>, vector<128x128xbf16>, vector<256x128xf32> -> vector<256x128xf32>
    %6 = arith.truncf %5 : vector<256x128xf32> to vector<256x128xbf16>
    %cst_7 = arith.constant dense<0.000000e+00> : vector<256x128xf32>
    %7 = tpu.matmul %1, %6, %cst_7 {dimension_numbers = #tpu.dot_dimension_numbers<[1], [0], [0], [1], [0, 0, 1, 1], [], []>} : vector<256x256xbf16>, vector<256x128xbf16>, vector<256x128xf32> -> vector<256x128xf32>
    %c0_8 = arith.constant 0 : index
    %c0_9 = arith.constant 0 : index
    %8 = vector.load %arg8[%c0_8, %c0_9] : memref<1x128xf32, #tpu.memory_space<vmem>>, vector<1x128xf32>
    %9 = vector.broadcast %8 : vector<1x128xf32> to vector<256x128xf32>
    %10 = arith.addf %7, %9 : vector<256x128xf32>
    %c0_10 = arith.constant 0 : index
    %c0_11 = arith.constant 0 : index
    %c0_12 = arith.constant 0 : index
    %11 = vector.load %arg5[%c0_10, %c0_11, %c0_12] : memref<1x32x256xbf16, #tpu.memory_space<vmem>>, vector<1x32x256xbf16>
    %12 = vector.shape_cast %11 : vector<1x32x256xbf16> to vector<32x256xbf16>
    %cst_13 = arith.constant dense<0.000000e+00> : vector<32x128xf32>
    %13 = tpu.matmul %12, %3, %cst_13 {dimension_numbers = #tpu.dot_dimension_numbers<[1], [0], [0], [1], [0, 0, 1, 1], [], []>} : vector<32x256xbf16>, vector<256x128xbf16>, vector<32x128xf32> -> vector<32x128xf32>
    %cst_14 = arith.constant 0.000000e+00 : f32
    %14 = vector.broadcast %cst_14 : f32 to vector<32x128xf32>
    %15 = arith.maximumf %13, %14 : vector<32x128xf32>
    %16 = arith.truncf %15 : vector<32x128xf32> to vector<32x128xbf16>
    %c0_15 = arith.constant 0 : index
    %c0_16 = arith.constant 0 : index
    %17 = vector.load %arg10[%c0_15, %c0_16] : memref<128x128xbf16, #tpu.memory_space<vmem>>, vector<128x128xbf16>
    %cst_17 = arith.constant dense<0.000000e+00> : vector<32x128xf32>
    %18 = tpu.matmul %16, %17, %cst_17 {dimension_numbers = #tpu.dot_dimension_numbers<[1], [0], [0], [1], [0, 0, 1, 1], [], []>} : vector<32x128xbf16>, vector<128x128xbf16>, vector<32x128xf32> -> vector<32x128xf32>
    %c0_18 = arith.constant 0 : index
    %c0_19 = arith.constant 0 : index
    %c0_20 = arith.constant 0 : index
    %19 = vector.load %arg3[%c0_18, %c0_19, %c0_20] : memref<1x256x32xbf16, #tpu.memory_space<vmem>>, vector<1x256x32xbf16>
    %20 = vector.shape_cast %19 : vector<1x256x32xbf16> to vector<256x32xbf16>
    %21 = arith.truncf %18 : vector<32x128xf32> to vector<32x128xbf16>
    %cst_21 = arith.constant dense<0.000000e+00> : vector<256x128xf32>
    %22 = tpu.matmul %20, %21, %cst_21 {dimension_numbers = #tpu.dot_dimension_numbers<[1], [0], [0], [1], [0, 0, 1, 1], [], []>} : vector<256x32xbf16>, vector<32x128xbf16>, vector<256x128xf32> -> vector<256x128xf32>
    %cst_22 = arith.constant 0.000000e+00 : f32
    %23 = vector.broadcast %cst_22 : f32 to vector<256x128xf32>
    %24 = arith.maximumf %10, %23 : vector<256x128xf32>
    %25 = arith.truncf %24 : vector<256x128xf32> to vector<256x128xbf16>
    %c0_23 = arith.constant 0 : index
    %c0_24 = arith.constant 0 : index
    %26 = vector.load %arg9[%c0_23, %c0_24] : memref<128x128xbf16, #tpu.memory_space<vmem>>, vector<128x128xbf16>
    %cst_25 = arith.constant dense<0.000000e+00> : vector<256x128xf32>
    %27 = tpu.matmul %25, %26, %cst_25 {dimension_numbers = #tpu.dot_dimension_numbers<[1], [0], [0], [1], [0, 0, 1, 1], [], []>} : vector<256x128xbf16>, vector<128x128xbf16>, vector<256x128xf32> -> vector<256x128xf32>
    %28 = arith.addf %27, %22 : vector<256x128xf32>
    %29 = arith.truncf %28 : vector<256x128xf32> to vector<256x128xbf16>
    %cst_26 = arith.constant dense<0.000000e+00> : vector<256x128xf32>
    %30 = tpu.matmul %1, %29, %cst_26 {dimension_numbers = #tpu.dot_dimension_numbers<[1], [0], [0], [1], [0, 0, 1, 1], [], []>} : vector<256x256xbf16>, vector<256x128xbf16>, vector<256x128xf32> -> vector<256x128xf32>
    %c0_27 = arith.constant 0 : index
    %c0_28 = arith.constant 0 : index
    %31 = vector.load %arg11[%c0_27, %c0_28] : memref<1x128xf32, #tpu.memory_space<vmem>>, vector<1x128xf32>
    %32 = vector.broadcast %31 : vector<1x128xf32> to vector<256x128xf32>
    %33 = arith.addf %30, %32 : vector<256x128xf32>
    %cst_29 = arith.constant 0.000000e+00 : f32
    %34 = vector.broadcast %cst_29 : f32 to vector<256x128xf32>
    %35 = arith.maximumf %33, %34 : vector<256x128xf32>
    %c0_30 = arith.constant 0 : index
    %c0_31 = arith.constant 0 : index
    %c0_32 = arith.constant 0 : index
    %36 = vector.load %arg4[%c0_30, %c0_31, %c0_32] : memref<1x32x256xbf16, #tpu.memory_space<vmem>>, vector<1x32x256xbf16>
    %37 = vector.shape_cast %36 : vector<1x32x256xbf16> to vector<32x256xbf16>
    %38 = arith.truncf %35 : vector<256x128xf32> to vector<256x128xbf16>
    %cst_33 = arith.constant dense<0.000000e+00> : vector<32x128xf32>
    %39 = tpu.matmul %37, %38, %cst_33 {dimension_numbers = #tpu.dot_dimension_numbers<[1], [0], [0], [1], [0, 0, 1, 1], [], []>} : vector<32x256xbf16>, vector<256x128xbf16>, vector<32x128xf32> -> vector<32x128xf32>
    %c0_34 = arith.constant 0 : index
    %c0_35 = arith.constant 0 : index
    %c0_36 = arith.constant 0 : index
    %40 = vector.load %arg6[%c0_34, %c0_35, %c0_36] : memref<1x32x1xf32, #tpu.memory_space<vmem>>, vector<1x32x1xf32>
    %41 = vector.shape_cast %40 : vector<1x32x1xf32> to vector<32x1xf32>
    %42 = vector.broadcast %41 : vector<32x1xf32> to vector<32x128xf32>
    %43 = arith.mulf %39, %42 : vector<32x128xf32>
    %c0_37 = arith.constant 0 : index
    %c0_38 = arith.constant 0 : index
    %c0_39 = arith.constant 0 : index
    %44 = vector.load %arg5[%c0_37, %c0_38, %c0_39] : memref<1x32x256xbf16, #tpu.memory_space<vmem>>, vector<1x32x256xbf16>
    %45 = vector.shape_cast %44 : vector<1x32x256xbf16> to vector<32x256xbf16>
    %46 = arith.truncf %10 : vector<256x128xf32> to vector<256x128xbf16>
    %cst_40 = arith.constant dense<0.000000e+00> : vector<32x128xf32>
    %47 = tpu.matmul %45, %46, %cst_40 {dimension_numbers = #tpu.dot_dimension_numbers<[1], [0], [0], [1], [0, 0, 1, 1], [], []>} : vector<32x256xbf16>, vector<256x128xbf16>, vector<32x128xf32> -> vector<32x128xf32>
    %c0_41 = arith.constant 0 : index
    %c0_42 = arith.constant 0 : index
    %c0_43 = arith.constant 0 : index
    %48 = vector.load %arg12[%c0_41, %c0_42, %c0_43] : memref<1x32x256xf32, #tpu.memory_space<vmem>>, vector<1x32x128xf32>
    %49 = vector.shape_cast %48 : vector<1x32x128xf32> to vector<32x128xf32>
    %50 = vector.shape_cast %43 : vector<32x128xf32> to vector<1x32x128xf32>
    tpu.vector_store %arg12[%c0_41, %c0_42, %c0_43], %50 {strides = array<i32>} : memref<1x32x256xf32, #tpu.memory_space<vmem>>, vector<1x32x128xf32>,
    %c0_44 = arith.constant 0 : index
    %c0_45 = arith.constant 0 : index
    %c128 = arith.constant 128 : index
    %51 = vector.load %arg12[%c0_44, %c0_45, %c128] : memref<1x32x256xf32, #tpu.memory_space<vmem>>, vector<1x32x128xf32>
    %52 = vector.shape_cast %51 : vector<1x32x128xf32> to vector<32x128xf32>
    %53 = vector.shape_cast %47 : vector<32x128xf32> to vector<1x32x128xf32>
    tpu.vector_store %arg12[%c0_44, %c0_45, %c128], %53 {strides = array<i32>} : memref<1x32x256xf32, #tpu.memory_space<vmem>>, vector<1x32x128xf32>,
    return
  }
  func.func @transform_0(%arg0: i32) -> (i32, i32, i32) {
    %c0_i32 = arith.constant 0 : i32
    %c0_i32_0 = arith.constant 0 : i32
    %c0_i32_1 = arith.constant 0 : i32
    return %arg0, %c0_i32, %c0_i32_0 : i32, i32, i32
  }
  func.func @transform_1(%arg0: i32) -> (i32, i32, i32) {
    %c0_i32 = arith.constant 0 : i32
    %c0_i32_0 = arith.constant 0 : i32
    %c0_i32_1 = arith.constant 0 : i32
    return %arg0, %c0_i32, %c0_i32_0 : i32, i32, i32
  }
  func.func @transform_2(%arg0: i32) -> (i32, i32, i32) {
    %c0_i32 = arith.constant 0 : i32
    %c0_i32_0 = arith.constant 0 : i32
    %c0_i32_1 = arith.constant 0 : i32
    %c0_i32_2 = arith.constant 0 : i32
    return %c0_i32, %c0_i32_0, %c0_i32_1 : i32, i32, i32
  }
  func.func @transform_3(%arg0: i32) -> (i32, i32, i32) {
    %c0_i32 = arith.constant 0 : i32
    %c0_i32_0 = arith.constant 0 : i32
    %c0_i32_1 = arith.constant 0 : i32
    return %arg0, %c0_i32, %c0_i32_0 : i32, i32, i32
  }
  func.func @transform_4(%arg0: i32) -> (i32, i32, i32) {
    %c0_i32 = arith.constant 0 : i32
    %c0_i32_0 = arith.constant 0 : i32
    %c0_i32_1 = arith.constant 0 : i32
    %c0_i32_2 = arith.constant 0 : i32
    return %c0_i32, %c0_i32_0, %c0_i32_1 : i32, i32, i32
  }
  func.func @transform_5(%arg0: i32) -> (i32, i32, i32) {
    %c0_i32 = arith.constant 0 : i32
    %c0_i32_0 = arith.constant 0 : i32
    %c0_i32_1 = arith.constant 0 : i32
    return %arg0, %c0_i32, %c0_i32_0 : i32, i32, i32
  }
  func.func @transform_6(%arg0: i32) -> (i32, i32) {
    %c0_i32 = arith.constant 0 : i32
    %c0_i32_0 = arith.constant 0 : i32
    %c0_i32_1 = arith.constant 0 : i32
    return %c0_i32, %c0_i32_0 : i32, i32
  }
  func.func @transform_7(%arg0: i32) -> (i32, i32) {
    %c0_i32 = arith.constant 0 : i32
    %c0_i32_0 = arith.constant 0 : i32
    %c0_i32_1 = arith.constant 0 : i32
    return %c0_i32, %c0_i32_0 : i32, i32
  }
  func.func @transform_8(%arg0: i32) -> (i32, i32) {
    %c0_i32 = arith.constant 0 : i32
    %c0_i32_0 = arith.constant 0 : i32
    %c0_i32_1 = arith.constant 0 : i32
    return %c0_i32, %c0_i32_0 : i32, i32
  }
  func.func @transform_9(%arg0: i32) -> (i32, i32) {
    %c0_i32 = arith.constant 0 : i32
    %c0_i32_0 = arith.constant 0 : i32
    %c0_i32_1 = arith.constant 0 : i32
    return %c0_i32, %c0_i32_0 : i32, i32
  }
  func.func @transform_10(%arg0: i32) -> (i32, i32) {
    %c0_i32 = arith.constant 0 : i32
    %c0_i32_0 = arith.constant 0 : i32
    %c0_i32_1 = arith.constant 0 : i32
    return %c0_i32, %c0_i32_0 : i32, i32
  }
  func.func @transform_11(%arg0: i32) -> (i32, i32, i32) {
    %c0_i32 = arith.constant 0 : i32
    %c0_i32_0 = arith.constant 0 : i32
    %c0_i32_1 = arith.constant 0 : i32
    return %arg0, %c0_i32, %c0_i32_0 : i32, i32, i32
  }
}

</mosaic_0001>

<bundles_post_ra>
// kernel: lt.45
= control target key start
LH: loop header
LB: loop body
LE: loop exit
PB: predicated region body
PF: predicated region fallthrough
CT: control target
= control target key end

     0   :  { %vm8_vm0 = vcmask 261120   ;;  %s42_s0 = inlined_call_operand.vmem [shape: s32[64], index: 0, kind: input, shape index: {}]   ;;  %s43_s1 = inlined_call_operand.vmem [shape: s32[2,32], index: 1, kind: output, shape index: {}]  }
   0x1   :  { %v5_v0 = vld [vmem:[%s42_s0] sm:$0x1]  ;;  %s25_s0 = smov 96  }
   0x2   :  { %6 = vst [vmem:[#allocation1] sm:$0x1] %v5_v0 }
   0x9   :  { %v10_v1 = vld [vmem:[#allocation1] sm:$0x1]  }
   0xa   :  { %v7_v2 = vld [vmem:[#allocation1] sm:$0x1]   ;;  %11 = vrot.lane.b32.xlu0 %v10_v1, %s25_s0 }
   0xb   :  { %9 = vst.msk [vmem:[#allocation0] sm:$0x1] %vm8_vm0, %v7_v2  }
  0x7c   :  { %v12_v3 = vpop.permute.xlu0 %11  }
  0x7d   :  { %15 = vst.msk [vmem:[#allocation0 + $0x1] sm:$0x1] %vm8_vm0, %v12_v3  }
  0x84   :  { %v20_v4 = vld [vmem:[#allocation0] sm:$0x3] }
  0x85   :  { %23 = vst [vmem:[%s43_s1] sm:$0x3] %v20_v4 }

// kernel: mul.21
= control target key start
LH: loop header
LB: loop body
LE: loop exit
PB: predicated region body
PF: predicated region fallthrough
CT: control target
= control target key end

     0   :  { %s34_s0 = inlined_call_operand.vmem [shape: f32[960], index: 0, kind: input, shape index: {}]   ;;  %s35_s1 = inlined_call_operand.vmem [shape: f32[960], index: 1, kind: input, shape index: {}]   ;;  %s36_s2 = inlined_call_operand.vmem [shape: f32[960], index: 2, kind: output, shape index: {}]  }
   0x1   :  { %v3_v0 = vld [vmem:[%s34_s0] sm:$0xff] }
   0x2   :  { %v4_v1 = vld [vmem:[%s35_s1] sm:$0xff] }
   0x3   :  { %v7_v2 = vmul.f32 %v4_v1, %v3_v0 }
   0x5   :  { %9 = vst [vmem:[%s36_s2] sm:$0xff] %v7_v2 }

// kernel: bu_rumor_gcn.1
= control target key start
LH: loop header
LB: loop body
LE: loop exit
PB: predicated region body
PF: predicated region fallthrough
CT: control target
= control target key end

     0   :  { %s3351_s17 = smov 0   ;;  %s4142_s0 = inlined_call_operand.vmem [shape: bf16[2,256,256], index: 0, kind: input, shape index: {}]   ;;  %s4143_s1 = inlined_call_operand.vmem [shape: bf16[2,256,128], index: 1, kind: input, shape index: {}]   ;;  %s4144_s2 = inlined_call_operand.vmem [shape: bf16[1,256,32], index: 2, kind: input, shape index: {}]   ;;  %s4145_s3 = inlined_call_operand.vmem [shape: bf16[2,32,256], index: 3, kind: input, shape index: {}]   ;;  %s4146_s4 = inlined_call_operand.vmem [shape: bf16[1,32,256], index: 4, kind: input, shape index: {}]   ;;  %s4147_s5 = inlined_call_operand.vmem [shape: f32[2,32,1], index: 5, kind: input, shape index: {}]   ;;  %s4148_s6 = inlined_call_operand.vmem [shape: bf16[128,128], index: 6, kind: input, shape index: {}]   ;;  %s4149_s7 = inlined_call_operand.vmem [shape: f32[1,128], index: 7, kind: input, shape index: {}]   ;;  %s4150_s8 = inlined_call_operand.vmem [shape: bf16[128,128], index: 8, kind: input, shape index: {}]   ;;  %s4151_s9 = inlined_call_operand.vmem [shape: bf16[128,128], index: 9, kind: input, shape index: {}]   ;;  %s4152_s10 = inlined_call_operand.vmem [shape: f32[1,128], index: 10, kind: input, shape index: {}]   ;;  %s4153_s11 = inlined_call_operand.vmem [shape: f32[2,32,256], index: 11, kind: output, shape index: {}]  }
   0x1 LB: > { %s2463_s18 = sadd.s32 4294967295, %s3288_s17   ;;  %p2467_p0 = scmp.ge.s32.totalorder %s3288_s17, 1  ;;  %s3288_s17 = sphi %s3351_s17, %s21_s17  }
   0x2   : > { %p367_p1 = scmp.lt.s32.totalorder %s3288_s17, 3 }
   0x4   : > { %p368_p2 = pnand %p2467_p0, %p367_p1 }
   0x6   : > { %371 = sbr.rel (%p368_p2) target bundleno = 1460 (0x5b4), region = 64 }
   0xb   : > { %v3162_v0 = vld [vmem:[%s4148_s6 + $0x38] sm:$0xff]   ;;  %p422_p3 = scmp.lt.s32.totalorder %s2463_s18, 1  ;;  %v3163_v1 = vld [vmem:[%s4148_s6 + $0x30] sm:$0xff]   ;;  %v3164_v2 = vld [vmem:[%s4148_s6 + $0x28] sm:$0xff]   ;;  %vm1483_vm0 = vcmask 261120  }
   0xc   : > { %2983 = vmatprep.subr.bf16.mxu0 %v3162_v0  ;;  %3135 = vmatprep.subr.bf16.mxu1 %v3162_v0  ;;  %v3165_v3 = vld [vmem:[%s4148_s6 + $0x20] sm:$0xff]   ;;  %v3166_v6 = vld [vmem:[%s4148_s6 + $0x18] sm:$0xff]   ;;  %v3167_v7 = vld [vmem:[%s4148_s6 + $0x10] sm:$0xff]  }
   0xd   : > { %s4380_s18 = smov (!%p422_p3, %s2463_s18), 1  ;;  %2984 = vmatpush3.bf16.msra.mxu0 %v3162_v0  ;;  %3143 = vmatpush3.bf16.msra.mxu1 %v3162_v0  ;;  %v3168_v8 = vld [vmem:[%s4148_s6 + $0x8] sm:$0xff]   ;;  %v3169_v9 = vld [vmem:[%s4148_s6] sm:$0xff]   ;;  %v3189_v26 = vld [vmem:[%s4146_s4 + $0x14] ss:$8 sps:$4 sm:$0xff]  }
   0xe   : > { %2985 = vmatprep.subr.bf16.mxu0 %v3163_v1  ;;  %3136 = vmatprep.subr.bf16.mxu1 %v3163_v1  ;;  %s2595_s25 = sshll.u32 %s4380_s18, 7  ;;  %v3188_v24 = vld [vmem:[%s4146_s4 + $0x4] ss:$8 sps:$4 sm:$0xff]   ;;  %v3186_v25 = vld [vmem:[%s4146_s4] ss:$8 sps:$4 sm:$0xff]   ;;  %v3192_v28 = vld [vmem:[%s4151_s9 + $0x38] sm:$0xff]  }
   0xf   : > { %s3374_s28 = scalar_lea.vmem %s4143_s1, %s2595_s25  ;;  %v3191_v27 = vld [vmem:[%s4146_s4 + $0x10] ss:$8 sps:$4 sm:$0xff]   ;;  %v3194_v30 = vld [vmem:[%s4151_s9 + $0x28] sm:$0xff]   ;;  %v3195_v31 = vld [vmem:[%s4151_s9 + $0x20] sm:$0xff]   ;;  %s2594_s25 = sshll.u32 %s4380_s18, 8 }
  0x10   : > { %v3380_v4 = vld [vmem:[%s3374_s28] sm:$0xff]   ;;  %v3182_v10 = vld [vmem:[%s3374_s28 + $0x78] sm:$0xff]   ;;  %v3172_v11 = vld [vmem:[%s3374_s28 + $0x8] sm:$0xff]   ;;  %s2596_s16 = sshll.u32 %s4380_s18, 5  ;;  %s2598_s14 = sshll.u32 %s4380_s18, 6 }
  0x11   : > { %2986 = vmatpush3.bf16.msra.mxu0 %v3163_v1  ;;  %3144 = vmatpush3.bf16.msra.mxu1 %v3163_v1  ;;  %v3383_v5 = vld [vmem:[%s3374_s28 + $0x40] sm:$0xff]   ;;  %v3173_v12 = vld [vmem:[%s3374_s28 + $0x48] sm:$0xff]   ;;  %v3174_v13 = vld [vmem:[%s3374_s28 + $0x10] sm:$0xff]   ;;  %s4000_s20 = scalar_lea.vmem %s4145_s3, %s2596_s16  ;;  %s441_s23 = scalar_lea.vmem %s4147_s5, %s2596_s16 }
  0x12   : > { %2987 = vmatprep.subr.bf16.mxu0 %v3164_v2  ;;  %3137 = vmatprep.subr.bf16.mxu1 %v3164_v2  ;;  %v3175_v14 = vld [vmem:[%s3374_s28 + $0x50] sm:$0xff]   ;;  %v3183_v15 = vld [vmem:[%s3374_s28 + $0x38] sm:$0xff]   ;;  %v3178_v20 = vld [vmem:[%s3374_s28 + $0x20] sm:$0xff]   ;;  %s4129_s19 = scalar_lea.vmem %s4153_s11, %s2598_s14 }
  0x13   : > { %2999 = vmatprep.mubr.bf16.mxu0 %v3380_v4  ;;  %3015 = vmatprep.mubr.bf16.mxu1 %v3383_v5  ;;  %v3184_v16 = vld [vmem:[%s3374_s28 + $0x70] sm:$0xff]   ;;  %v3176_v18 = vld [vmem:[%s3374_s28 + $0x18] sm:$0xff]   ;;  %v3179_v21 = vld [vmem:[%s3374_s28 + $0x60] sm:$0xff]  }
  0x14   : > { %v3185_v17 = vld [vmem:[%s3374_s28 + $0x30] sm:$0xff]   ;;  %v3177_v19 = vld [vmem:[%s3374_s28 + $0x58] sm:$0xff]   ;;  %v3181_v22 = vld [vmem:[%s3374_s28 + $0x68] sm:$0xff]  }
  0x15   : > { %2988 = vmatpush3.bf16.msra.mxu0 %v3164_v2  ;;  %3145 = vmatpush3.bf16.msra.mxu1 %v3164_v2  ;;  %v3180_v23 = vld [vmem:[%s3374_s28 + $0x28] sm:$0xff]   ;;  %v3193_v29 = vld [vmem:[%s4151_s9 + $0x30] sm:$0xff]   ;;  %v3196_v32 = vld [vmem:[%s4151_s9 + $0x18] sm:$0xff]   ;;  %s3449_s28 = scalar_lea.vmem %s4142_s0, %s2594_s25 }
  0x16   : > { %2989 = vmatprep.subr.bf16.mxu0 %v3165_v3  ;;  %3138 = vmatprep.subr.bf16.mxu1 %v3165_v3  ;;  %v3197_v33 = vld [vmem:[%s4151_s9 + $0x10] sm:$0xff]   ;;  %v3452_v34 = vld [vmem:[%s3449_s28 + $0x4] ss:$8 sps:$4 sm:$0xff]  }
  0x17   : > { %v3201_v35 = vld [vmem:[%s4151_s9 + $0x8] sm:$0xff]   ;;  %v3202_v36 = vld [vmem:[%s4151_s9] sm:$0xff]  }
  0x19   : > { %2990 = vmatpush3.bf16.msra.mxu0 %v3165_v3  ;;  %3146 = vmatpush3.bf16.msra.mxu1 %v3165_v3 }
  0x1a   : > { %2991 = vmatprep.subr.bf16.mxu0 %v3166_v6  ;;  %3139 = vmatprep.subr.bf16.mxu1 %v3166_v6 }
  0x1d   : > { %2992 = vmatpush3.bf16.msra.mxu0 %v3166_v6  ;;  %3147 = vmatpush3.bf16.msra.mxu1 %v3166_v6 }
  0x1e   : > { %2993 = vmatprep.subr.bf16.mxu0 %v3167_v7  ;;  %3140 = vmatprep.subr.bf16.mxu1 %v3167_v7 }
  0x21   : > { %2994 = vmatpush3.bf16.msra.mxu0 %v3167_v7  ;;  %3148 = vmatpush3.bf16.msra.mxu1 %v3167_v7 }
  0x22   : > { %2995 = vmatprep.subr.bf16.mxu0 %v3168_v8  ;;  %3141 = vmatprep.subr.bf16.mxu1 %v3168_v8 }
  0x25   : > { %2996 = vmatpush3.bf16.msra.mxu0 %v3168_v8  ;;  %3149 = vmatpush3.bf16.msra.mxu1 %v3168_v8 }
  0x26   : > { %2997 = vmatprep.subr.bf16.mxu0 %v3169_v9  ;;  %3142 = vmatprep.subr.bf16.mxu1 %v3169_v9 }
  0x29   : > { %2998 = vmatpush3.bf16.msra.mxu0 %v3169_v9  ;;  %3150 = vmatpush3.bf16.msra.mxu1 %v3169_v9 }
  0x2a   : > { %2735 = vmatprep.subr.bf16.mxu0 %v3182_v10 }
  0x2c   : > { %3000 = vmatmul.mubr.bf16.vlgmr.msra.gmra.mxu0 %v3172_v11  ;;  %3016 = vmatmul.mubr.bf16.vlgmr.msra.gmra.mxu1 %v3173_v12 }
  0x2d   : > { %3003 = vmatprep.mubr.bf16.mxu0 %v3174_v13  ;;  %3019 = vmatprep.mubr.bf16.mxu1 %v3175_v14 }
  0x2e   : > { %2736 = vmatpush3.bf16.msra.mxu0 %v3183_v15 }
  0x2f   : > { %2737 = vmatprep.subr.bf16.mxu0 %v3184_v16 }
  0x32   : > { %2738 = vmatpush3.bf16.msra.mxu0 %v3185_v17 }
  0x33   : > { %2739 = vmatprep.subr.bf16.mxu0 %v3181_v22 }
  0x34   : > { %3004 = vmatmul.mubr.bf16.gmra.mxu0 %v3176_v18  ;;  %3020 = vmatmul.mubr.bf16.gmra.mxu1 %v3177_v19 }
  0x35   : > { %3007 = vmatprep.mubr.bf16.mxu0 %v3178_v20  ;;  %3023 = vmatprep.mubr.bf16.mxu1 %v3179_v21 }
  0x36   : > { %2740 = vmatpush3.bf16.msra.mxu0 %v3180_v23 }
  0x37   : > { %2741 = vmatprep.subr.bf16.mxu0 %v3179_v21 }
  0x3a   : > { %2742 = vmatpush3.bf16.msra.mxu0 %v3178_v20 }
  0x3b   : > { %2743 = vmatprep.subr.bf16.mxu0 %v3177_v19 }
  0x3c   : > { %3008 = vmatmul.mubr.bf16.gmra.mxu0 %v3180_v23  ;;  %3024 = vmatmul.mubr.bf16.gmra.mxu1 %v3181_v22 }
  0x3d   : > { %3011 = vmatprep.mubr.bf16.mxu0 %v3185_v17  ;;  %3027 = vmatprep.mubr.bf16.mxu1 %v3184_v16 }
  0x3e   : > { %2744 = vmatpush3.bf16.msra.mxu0 %v3176_v18 }
  0x3f   : > { %2745 = vmatprep.subr.bf16.mxu0 %v3175_v14 }
  0x42   : > { %2746 = vmatpush3.bf16.msra.mxu0 %v3174_v13 }
  0x43   : > { %2747 = vmatprep.subr.bf16.mxu0 %v3173_v12 }
  0x44   : > { %3012 = vmatmul.mubr.bf16.gmra.mxu0 %v3183_v15  ;;  %3028 = vmatmul.mubr.bf16.gmra.mxu1 %v3182_v10 }
  0x45   : > { %1233 = vmatprep.mubr.bf16.mxu0 %v3188_v24  ;;  %1048 = vmatprep.mubr.bf16.mxu1 %v3452_v34 }
  0x46   : > { %2748 = vmatpush3.bf16.msra.mxu0 %v3172_v11 }
  0x47   : > { %2749 = vmatprep.subr.bf16.mxu0 %v3383_v5 }
  0x4a   : > { %2750 = vmatpush3.bf16.msra.mxu0 %v3380_v4 }
  0x4b   : > { %3031 = vmatprep.subr.bf16.mxu0 %v3192_v28 }
  0x4d   : > { %1234 = vmatmul.mubr.bf16.vlgmr.msra.gmra.mxu0 %v3186_v25 }
  0x4e   : > { %1241 = vmatprep.mubr.bf16.mxu0 %v3189_v26  ;;  %3032 = vmatpush3.bf16.msra.mxu0 %v3192_v28 }
  0x4f   : > { %3033 = vmatprep.subr.bf16.mxu0 %v3193_v29 }
  0x52   : > { %3034 = vmatpush3.bf16.msra.mxu0 %v3193_v29 }
  0x53   : > { %3035 = vmatprep.subr.bf16.mxu0 %v3194_v30 }
  0x55   : > { %1242 = vmatmul.mubr.bf16.gmra.mxu0 %v3191_v27 }
  0x56   : > { %3036 = vmatpush3.bf16.msra.mxu0 %v3194_v30 }
  0x57   : > { %3037 = vmatprep.subr.bf16.mxu0 %v3195_v31 }
  0x5a   : > { %3038 = vmatpush3.bf16.msra.mxu0 %v3195_v31 }
  0x5b   : > { %3039 = vmatprep.subr.bf16.mxu0 %v3196_v32 }
  0x5e   : > { %3040 = vmatpush3.bf16.msra.mxu0 %v3196_v32 }
  0x5f   : > { %3041 = vmatprep.subr.bf16.mxu0 %v3197_v33 }
  0x62   : > { %3042 = vmatpush3.bf16.msra.mxu0 %v3197_v33 }
  0x63   : > { %3043 = vmatprep.subr.bf16.mxu0 %v3201_v35 }
  0x66   : > { %3044 = vmatpush3.bf16.msra.mxu0 %v3201_v35 }
  0x67   : > { %3045 = vmatprep.subr.bf16.mxu0 %v3202_v36 }
  0x6a   : > { %3046 = vmatpush3.bf16.msra.mxu0 %v3202_v36 }
  0xec   : > { %v3461_v37 = vpop.f32.mrf.mxu0  ;;  %v3463_v38 = vpop.f32.mrf.mxu1 }
  0xee   : > { %v3465_v39 = vpop.f32.mrf.mxu0  ;;  %v3467_v40 = vpop.f32.mrf.mxu1 }
  0xf0   : > { %v3469_v41 = vpop.f32.mrf.mxu0  ;;  %v3471_v42 = vpop.f32.mrf.mxu1 }
  0xf1   : > { %v842_v35 = vpack.c.bf16 %v3471_v42, %v3463_v38  ;;  %v3492_v42 = vld [vmem:[%s3449_s28] ss:$8 sps:$4 sm:$0xff]  }
  0xf2   : > { %v3473_v43 = vpop.f32.mrf.mxu0  ;;  %v3475_v44 = vpop.f32.mrf.mxu1  ;;  %4221 = vst [vmem:[#allocation2_spill] sm:$0xff] %v3492_v42 }
  0xf3   : > { %v833_v38 = vpack.c.bf16 %v3473_v43, %v3465_v39  ;;  %v3250_v39 = vld [vmem:[%s4150_s8 + $0x28] sm:$0xff]  }
  0xf4   : > { %v3005_v45 = vpop.f32.mrf.mxu0  ;;  %v3021_v46 = vpop.f32.mrf.mxu1  ;;  %v3509_v43 = vld [vmem:[%s3449_s28 + $0x24] ss:$8 sps:$4 sm:$0xff]  }
  0xf5   : > { %4224 = vst [vmem:[#allocation5_spill] sm:$0xff] %v3509_v43 }
  0xf6   : > { %v3477_v47 = vpop.f32.mrf.mxu0  ;;  %v786_v48 = vpop.f32.mrf.mxu1 }
  0xf8   : > { %v3006_v49 = vpop.f32.mrf.mxu0  ;;  %v3022_v50 = vpop.f32.mrf.mxu1 }
  0xf9   : > { %v844_v22 = vpack.c.bf16 %v3022_v50, %v3021_v46  ;;  %v836_v27 = vpack.c.bf16 %v3006_v49, %v3005_v45  ;;  %v834_v45 = vpack.c.bf16 %v3469_v41, %v3461_v37  ;;  %v841_v46 = vpack.c.bf16 %v3475_v44, %v3467_v40  ;;  %v3495_v37 = vld [vmem:[%s3449_s28 + $0x14] ss:$8 sps:$4 sm:$0xff]   ;;  %v3506_v41 = vld [vmem:[%s3449_s28 + $0x10] ss:$8 sps:$4 sm:$0xff]   ;;  %v3514_v44 = vld [vmem:[%s3449_s28 + $0x20] ss:$8 sps:$4 sm:$0xff]  }
  0xfa   : > { %v725_v51 = vpop.f32.mrf.mxu0  ;;  %v789_v52 = vpop.f32.mrf.mxu1  ;;  %4222 = vst [vmem:[#allocation3_spill] sm:$0xff] %v3495_v37  ;;  %v3249_v40 = vld [vmem:[%s4150_s8 + $0x30] sm:$0xff]   ;;  %4223 = vst [vmem:[#allocation4_spill] sm:$0xff] %v3506_v41  ;;  %v3525_v50 = vld [vmem:[%s3449_s28 + $0x44] ss:$8 sps:$4 sm:$0xff]  }
  0xfb   : > { %v843_v28 = vpack.c.bf16 %v789_v52, %v786_v48  ;;  %v835_v32 = vpack.c.bf16 %v725_v51, %v3477_v47  ;;  %v3248_v47 = vld [vmem:[%s4150_s8 + $0x38] sm:$0xff]   ;;  %4225 = vst [vmem:[#allocation6_spill] sm:$0xff] %v3514_v44  ;;  %4228 = vst [vmem:[#allocation9_spill] sm:$0xff] %v3525_v50  ;;  %v3530_v51 = vld [vmem:[%s3449_s28 + $0x40] ss:$8 sps:$4 sm:$0xff]  }
  0xfc   : > { %v3009_v53 = vpop.f32.mrf.mxu0  ;;  %v3025_v54 = vpop.f32.mrf.mxu1  ;;  %v3517_v48 = vld [vmem:[%s3449_s28 + $0x34] ss:$8 sps:$4 sm:$0xff]   ;;  %v3522_v49 = vld [vmem:[%s3449_s28 + $0x30] ss:$8 sps:$4 sm:$0xff]   ;;  %4229 = vst [vmem:[#allocation10_spill] sm:$0xff] %v3530_v51 }
  0xfd   : > { %4226 = vst [vmem:[#allocation7_spill] sm:$0xff] %v3517_v48  ;;  %4227 = vst [vmem:[#allocation8_spill] sm:$0xff] %v3522_v49  ;;  %v3533_v52 = vld [vmem:[%s3449_s28 + $0x54] ss:$8 sps:$4 sm:$0xff]  }
  0xfe   : > { %v738_v55 = vpop.f32.mrf.mxu0  ;;  %v802_v56 = vpop.f32.mrf.mxu1  ;;  %4230 = vst [vmem:[#allocation11_spill] sm:$0xff] %v3533_v52 }
 0x100   : > { %v3010_v57 = vpop.f32.mrf.mxu0  ;;  %v3026_v58 = vpop.f32.mrf.mxu1 }
 0x101   : > { %v846_v10 = vpack.c.bf16 %v3026_v58, %v3025_v54  ;;  %v838_v14 = vpack.c.bf16 %v3010_v57, %v3009_v53  ;;  %v3538_v53 = vld [vmem:[%s3449_s28 + $0x50] ss:$8 sps:$4 sm:$0xff]   ;;  %v3541_v54 = vld [vmem:[%s3449_s28 + $0x64] ss:$8 sps:$4 sm:$0xff]  }
 0x102   : > { %v741_v59 = vpop.f32.mrf.mxu0  ;;  %v805_v60 = vpop.f32.mrf.mxu1  ;;  %4231 = vst [vmem:[#allocation12_spill] sm:$0xff] %v3538_v53  ;;  %4232 = vst [vmem:[#allocation13_spill] sm:$0xff] %v3541_v54  ;;  %v3554_v57 = vld [vmem:[%s3449_s28 + $0x70] ss:$8 sps:$4 sm:$0xff]   ;;  %v3557_v58 = vld [vmem:[%s3449_s28 + $0x84] ss:$8 sps:$4 sm:$0xff]  }
 0x103   : > { %v845_v15 = vpack.c.bf16 %v805_v60, %v802_v56  ;;  %v837_v20 = vpack.c.bf16 %v741_v59, %v738_v55  ;;  %v3546_v55 = vld [vmem:[%s3449_s28 + $0x60] ss:$8 sps:$4 sm:$0xff]   ;;  %v3549_v56 = vld [vmem:[%s3449_s28 + $0x74] ss:$8 sps:$4 sm:$0xff]   ;;  %4235 = vst [vmem:[#allocation16_spill] sm:$0xff] %v3554_v57  ;;  %4236 = vst [vmem:[#allocation17_spill] sm:$0xff] %v3557_v58 }
 0x104   : > { %v3013_v61 = vpop.f32.mrf.mxu0  ;;  %v3029_v62 = vpop.f32.mrf.mxu1  ;;  %4233 = vst [vmem:[#allocation14_spill] sm:$0xff] %v3546_v55  ;;  %4234 = vst [vmem:[#allocation15_spill] sm:$0xff] %v3549_v56  ;;  %v3562_v59 = vld [vmem:[%s3449_s28 + $0x80] ss:$8 sps:$4 sm:$0xff]   ;;  %v3565_v60 = vld [vmem:[%s3449_s28 + $0x94] ss:$8 sps:$4 sm:$0xff]  }
 0x105   : > { %4237 = vst [vmem:[#allocation18_spill] sm:$0xff] %v3562_v59  ;;  %4238 = vst [vmem:[#allocation19_spill] sm:$0xff] %v3565_v60 }
 0x106   : > { %v754_v63 = vpop.f32.mrf.mxu0  ;;  %v818_v0 = vpop.f32.mrf.mxu1 }
 0x108   : > { %v3014_v1 = vpop.f32.mrf.mxu0  ;;  %v3030_v2 = vpop.f32.mrf.mxu1 }
 0x109   : > { %v840_v3 = vpack.c.bf16 %v3014_v1, %v3013_v61  ;;  %v848_v4 = vpack.c.bf16 %v3030_v2, %v3029_v62  ;;  %v3251_v61 = vld [vmem:[%s4150_s8 + $0x20] sm:$0xff]   ;;  %v3573_v62 = vld [vmem:[%s3449_s28 + $0x90] ss:$8 sps:$4 sm:$0xff]  }
 0x10a   : > { %v821_v5 = vpop.f32.mrf.mxu1  ;;  %v757_v6 = vpop.f32.mrf.mxu0  ;;  %4239 = vst [vmem:[#allocation20_spill] sm:$0xff] %v3573_v62  ;;  %v3253_v1 = vld [vmem:[%s4150_s8 + $0x10] sm:$0xff]   ;;  %v3587_v2 = vld [vmem:[%s3449_s28 + $0xa0] ss:$8 sps:$4 sm:$0xff]  }
 0x10b   : > { %v847_v7 = vpack.c.bf16 %v821_v5, %v818_v0  ;;  %2623 = vmatprep.subr.bf16.mxu1 %v848_v4  ;;  %v839_v9 = vpack.c.bf16 %v757_v6, %v754_v63  ;;  %v3576_v63 = vld [vmem:[%s3449_s28 + $0xa4] ss:$8 sps:$4 sm:$0xff]   ;;  %v3252_v0 = vld [vmem:[%s4150_s8 + $0x18] sm:$0xff]   ;;  %4241 = vst [vmem:[#allocation22_spill] sm:$0xff] %v3587_v2 }
 0x10c   : > { %2624 = vmatpush3.bf16.msra.mxu1 %v840_v3  ;;  %4240 = vst [vmem:[#allocation21_spill] sm:$0xff] %v3576_v63  ;;  %v3590_v3 = vld [vmem:[%s3449_s28 + $0xb4] ss:$8 sps:$4 sm:$0xff]   ;;  %v3254_v4 = vld [vmem:[%s4150_s8 + $0x8] sm:$0xff]   ;;  %v3255_v5 = vld [vmem:[%s4150_s8] sm:$0xff]  }
 0x10d   : > { %2625 = vmatprep.subr.bf16.mxu1 %v847_v7  ;;  %v2751_v8 = vpop.f32.mrf.mxu0  ;;  %4242 = vst [vmem:[#allocation23_spill] sm:$0xff] %v3590_v3  ;;  %v3601_v6 = vld [vmem:[%s3449_s28 + $0xb0] ss:$8 sps:$4 sm:$0xff]   ;;  %v3256_v7 = vld [vmem:[%s4144_s2] sm:$0xff]  }
 0x10e   : > { %4243 = vst [vmem:[#allocation24_spill] sm:$0xff] %v3601_v6 }
 0x10f   : > { %v2752_v11 = vpop.f32.mrf.mxu0 }
 0x110   : > { %2626 = vmatpush3.bf16.msra.mxu1 %v839_v9  ;;  %v2753_v12 = vadd.f32 %v2752_v11, %v2751_v8  ;;  %v3607_v8 = vld [vmem:[%s3449_s28 + $0xc4] ss:$8 sps:$4 sm:$0xff]   ;;  %v3613_v9 = vld [vmem:[%s3449_s28 + $0xc0] ss:$8 sps:$4 sm:$0xff]   ;;  %v3621_v11 = vld [vmem:[%s3449_s28 + $0xd0] ss:$8 sps:$4 sm:$0xff]  }
 0x111   : > { %2627 = vmatprep.subr.bf16.mxu1 %v846_v10  ;;  %v2754_v13 = vpop.f32.mrf.mxu0  ;;  %4244 = vst [vmem:[#allocation25_spill] sm:$0xff] %v3607_v8  ;;  %4245 = vst [vmem:[#allocation26_spill] sm:$0xff] %v3613_v9  ;;  %v3616_v10 = vld [vmem:[%s3449_s28 + $0xd4] ss:$8 sps:$4 sm:$0xff]  }
 0x112   : > { %v1250_v17 = vmax.f32 %v2753_v12, 0.0  ;;  %4246 = vst [vmem:[#allocation27_spill] sm:$0xff] %v3616_v10  ;;  %4247 = vst [vmem:[#allocation28_spill] sm:$0xff] %v3621_v11  ;;  %v3624_v12 = vld [vmem:[%s3449_s28 + $0xe4] ss:$8 sps:$4 sm:$0xff]  }
 0x113   : > { %v2755_v16 = vpop.f32.mrf.mxu0  ;;  %4248 = vst [vmem:[#allocation29_spill] sm:$0xff] %v3624_v12 }
 0x114   : > { %2628 = vmatpush3.bf16.msra.mxu1 %v838_v14  ;;  %v2756_v18 = vadd.f32 %v2755_v16, %v2754_v13  ;;  %v3629_v13 = vld [vmem:[%s3449_s28 + $0xe0] ss:$8 sps:$4 sm:$0xff]   ;;  %v3632_v14 = vld [vmem:[%s3449_s28 + $0xf4] ss:$8 sps:$4 sm:$0xff]  }
 0x115   : > { %2629 = vmatprep.subr.bf16.mxu1 %v845_v15  ;;  %v2757_v19 = vpop.f32.mrf.mxu0  ;;  %4249 = vst [vmem:[#allocation30_spill] sm:$0xff] %v3629_v13  ;;  %4250 = vst [vmem:[#allocation31_spill] sm:$0xff] %v3632_v14  ;;  %v3637_v15 = vld [vmem:[%s3449_s28 + $0xf0] ss:$8 sps:$4 sm:$0xff]  }
 0x116   : > { %v1251_v21 = vmax.f32 %v2756_v18, 0.0  ;;  %4251 = vst [vmem:[#allocation32_spill] sm:$0xff] %v3637_v15 }
 0x117   : > { %v2758_v23 = vpop.f32.mrf.mxu0 }
 0x118   : > { %2630 = vmatpush3.bf16.msra.mxu1 %v837_v20  ;;  %v1254_v24 = vpack.c.bf16 %v1251_v21, %v1250_v17  ;;  %v2759_v25 = vadd.f32 %v2758_v23, %v2757_v19 }
 0x119   : > { %2631 = vmatprep.subr.bf16.mxu1 %v844_v22  ;;  %v2760_v26 = vpop.f32.mrf.mxu0 }
 0x11a   : > { %3047 = vmatprep.mubr.bf16.mxu0 %v1254_v24  ;;  %v1252_v30 = vmax.f32 %v2759_v25, 0.0  ;;  %v3257_v24 = vld [vmem:[%s4144_s2 + $0x8] sm:$0xff]  }
 0x11b   : > { %v2761_v29 = vpop.f32.mrf.mxu0 }
 0x11c   : > { %2632 = vmatpush3.bf16.msra.mxu1 %v836_v27  ;;  %v2762_v31 = vadd.f32 %v2761_v29, %v2760_v26  ;;  %v3258_v26 = vld [vmem:[%s4144_s2 + $0x10] sm:$0xff]   ;;  %v3649_v27 = vld [vmem:[%s4149_s7] ss:$0 sm:$0xff] }
 0x11d   : > { %2633 = vmatprep.subr.bf16.mxu1 %v843_v28 }
 0x11e   : > { %v1253_v33 = vmax.f32 %v2762_v31, 0.0 }
 0x120   : > { %2634 = vmatpush3.bf16.msra.mxu1 %v835_v32  ;;  %v1255_v36 = vpack.c.bf16 %v1253_v33, %v1252_v30 }
 0x121   : > { %2635 = vmatprep.subr.bf16.mxu1 %v842_v35 }
 0x122   : > { %3048 = vmatmul.mubr.bf16.vlgmr.msra.gmra.mxu0 %v1255_v36  ;;  %v3259_v36 = vld [vmem:[%s4144_s2 + $0x18] sm:$0xff]  }
 0x123   : > { %3055 = vmatprep.mubr.msk.bf16.mxu0 %vm1483_vm0, %v3256_v7 }
 0x124   : > { %2636 = vmatpush3.bf16.msra.mxu1 %v834_v45 }
 0x125   : > { %2637 = vmatprep.subr.bf16.mxu1 %v841_v46 }
 0x128   : > { %2638 = vmatpush3.bf16.msra.mxu1 %v833_v38 }
 0x129   : > { %3087 = vmatprep.subr.bf16.mxu1 %v3248_v47 }
 0x12b   : > { %1049 = vmatmul.mubr.bf16.vlgmr.msra.gmra.mxu1 %v3492_v42 }
 0x12c   : > { %1056 = vmatprep.mubr.bf16.mxu1 %v3495_v37  ;;  %3088 = vmatpush3.bf16.msra.mxu1 %v3248_v47 }
 0x12d   : > { %3089 = vmatprep.subr.bf16.mxu1 %v3249_v40 }
 0x130   : > { %3090 = vmatpush3.bf16.msra.mxu1 %v3249_v40  ;;  %v3260_v40 = vld [vmem:[%s4144_s2 + $0x20] sm:$0xff]  }
 0x131   : > { %3091 = vmatprep.subr.bf16.mxu1 %v3250_v39 }
 0x133   : > { %1057 = vmatmul.mubr.bf16.gmra.mxu1 %v3506_v41 }
 0x134   : > { %1064 = vmatprep.mubr.bf16.mxu1 %v3509_v43  ;;  %3092 = vmatpush3.bf16.msra.mxu1 %v3250_v39 }
 0x135   : > { %3093 = vmatprep.subr.bf16.mxu1 %v3251_v61 }
 0x138   : > { %3094 = vmatpush3.bf16.msra.mxu1 %v3251_v61 }
 0x139   : > { %3095 = vmatprep.subr.bf16.mxu1 %v3252_v0 }
 0x13b   : > { %1065 = vmatmul.mubr.bf16.gmra.mxu1 %v3514_v44 }
 0x13c   : > { %1072 = vmatprep.mubr.bf16.mxu1 %v3517_v48  ;;  %3096 = vmatpush3.bf16.msra.mxu1 %v3252_v0 }
 0x13d   : > { %3097 = vmatprep.subr.bf16.mxu1 %v3253_v1 }
 0x140   : > { %3098 = vmatpush3.bf16.msra.mxu1 %v3253_v1 }
 0x141   : > { %3099 = vmatprep.subr.bf16.mxu1 %v3254_v4 }
 0x143   : > { %1073 = vmatmul.mubr.bf16.gmra.mxu1 %v3522_v49 }
 0x144   : > { %1080 = vmatprep.mubr.bf16.mxu1 %v3525_v50  ;;  %3100 = vmatpush3.bf16.msra.mxu1 %v3254_v4 }
 0x145   : > { %3101 = vmatprep.subr.bf16.mxu1 %v3255_v5 }
 0x148   : > { %3102 = vmatpush3.bf16.msra.mxu1 %v3255_v5 }
 0x14b   : > { %1081 = vmatmul.mubr.bf16.gmra.mxu1 %v3530_v51 }
 0x14c   : > { %1088 = vmatprep.mubr.bf16.mxu1 %v3533_v52 }
 0x153   : > { %1089 = vmatmul.mubr.bf16.gmra.mxu1 %v3538_v53 }
 0x154   : > { %1096 = vmatprep.mubr.bf16.mxu1 %v3541_v54 }
 0x15b   : > { %1097 = vmatmul.mubr.bf16.gmra.mxu1 %v3546_v55 }
 0x15c   : > { %1104 = vmatprep.mubr.bf16.mxu1 %v3549_v56 }
 0x163   : > { %1105 = vmatmul.mubr.bf16.gmra.mxu1 %v3554_v57 }
 0x164   : > { %1112 = vmatprep.mubr.bf16.mxu1 %v3557_v58 }
 0x16b   : > { %1113 = vmatmul.mubr.bf16.gmra.mxu1 %v3562_v59 }
 0x16c   : > { %1120 = vmatprep.mubr.bf16.mxu1 %v3565_v60 }
 0x173   : > { %1121 = vmatmul.mubr.bf16.gmra.mxu1 %v3573_v62 }
 0x174   : > { %1128 = vmatprep.mubr.bf16.mxu1 %v3576_v63 }
 0x17b   : > { %1129 = vmatmul.mubr.bf16.gmra.mxu1 %v3587_v2 }
 0x17c   : > { %1136 = vmatprep.mubr.bf16.mxu1 %v3590_v3 }
 0x183   : > { %1137 = vmatmul.mubr.bf16.gmra.mxu1 %v3601_v6 }
 0x184   : > { %1144 = vmatprep.mubr.bf16.mxu1 %v3607_v8 }
 0x18b   : > { %1145 = vmatmul.mubr.bf16.gmra.mxu1 %v3613_v9 }
 0x18c   : > { %1152 = vmatprep.mubr.bf16.mxu1 %v3616_v10 }
 0x193   : > { %1153 = vmatmul.mubr.bf16.gmra.mxu1 %v3621_v11 }
 0x194   : > { %1160 = vmatprep.mubr.bf16.mxu1 %v3624_v12 }
 0x19b   : > { %1161 = vmatmul.mubr.bf16.gmra.mxu1 %v3629_v13 }
 0x19c   : > { %1168 = vmatprep.mubr.bf16.mxu1 %v3632_v14 }
 0x1a3   : > { %1169 = vmatmul.mubr.bf16.gmra.mxu1 %v3637_v15 }
 0x1e2   : > { %v3049_v16 = vpop.f32.mrf.mxu0 }
 0x1e4   : > { %v1354_v17 = vpop.f32.mrf.mxu0 }
 0x1e6   : > { %v3050_v18 = vpop.f32.mrf.mxu0 }
 0x1e7   : > { %v1402_v19 = vpack.c.bf16 %v3050_v18, %v3049_v16 }
 0x1e8   : > { %v1357_v20 = vpop.f32.mrf.mxu0 }
 0x1e9   : > { %3051 = vmatprep.subr.bf16.mxu0 %v1402_v19  ;;  %v1401_v21 = vpack.c.bf16 %v1357_v20, %v1354_v17  ;;  %v3261_v17 = vld [vmem:[%s4144_s2 + $0x28] sm:$0xff]  }
 0x1ea   : > { %3052 = vmatpush3.bf16.msra.mxu0 %v1402_v19 }
 0x1eb   : > { %v2639_v22 = vpop.f32.mrf.mxu1  ;;  %3053 = vmatprep.subr.bf16.mxu0 %v1401_v21 }
 0x1ed   : > { %v2640_v23 = vpop.f32.mrf.mxu1 }
 0x1ee   : > { %v2641_v25 = vadd.f32 %v2640_v23, %v2639_v22  ;;  %3054 = vmatpush3.bf16.msra.mxu0 %v1401_v21  ;;  %v3262_v22 = vld [vmem:[%s4144_s2 + $0x30] sm:$0xff]  }
 0x1ef   : > { %v2642_v28 = vpop.f32.mrf.mxu1 }
 0x1f0   : > { %v3653_v30 = vadd.f32 %v2641_v25, %v3649_v27 }
 0x1f1   : > { %v2643_v29 = vpop.f32.mrf.mxu1  ;;  %3056 = vmatmul.mubr.msk.bf16.vlgmr.msra.gmra.mxu0 %vm1483_vm0, %v3257_v24 }
 0x1f2   : > { %4252 = vst [vmem:[#allocation33_spill] sm:$0xff] %v3653_v30  ;;  %v2644_v31 = vadd.f32 %v2643_v29, %v2642_v28  ;;  %3059 = vmatprep.mubr.msk.bf16.mxu0 %vm1483_vm0, %v3258_v26  ;;  %v1693_v45 = vmax.f32 %v3653_v30, 0.0 }
 0x1f3   : > { %v2645_v32 = vpop.f32.mrf.mxu1 }
 0x1f4   : > { %v3657_v33 = vadd.f32 %v2644_v31, %v3649_v27 }
 0x1f5   : > { %v2646_v35 = vpop.f32.mrf.mxu1 }
 0x1f6   : > { %4253 = vst [vmem:[#allocation34_spill] sm:$0xff] %v3657_v33  ;;  %v1694_v46 = vmax.f32 %v3657_v33, 0.0  ;;  %v2647_v38 = vadd.f32 %v2646_v35, %v2645_v32  ;;  %v3263_v35 = vld [vmem:[%s4144_s2 + $0x38] sm:$0xff]  }
 0x1f7   : > { %v2648_v39 = vpop.f32.mrf.mxu1 }
 0x1f8   : > { %v1725_v61 = vpack.c.bf16 %v1694_v46, %v1693_v45  ;;  %v3671_v1 = vadd.f32 %v2647_v38, %v3649_v27 }
 0x1f9   : > { %v2649_v0 = vpop.f32.mrf.mxu1  ;;  %3060 = vmatmul.mubr.msk.bf16.gmra.mxu0 %vm1483_vm0, %v3259_v36 }
 0x1fa   : > { %4254 = vst [vmem:[#allocation35_spill] sm:$0xff] %v3671_v1  ;;  %v2650_v4 = vadd.f32 %v2649_v0, %v2648_v39  ;;  %3103 = vmatprep.mubr.bf16.mxu1 %v1725_v61  ;;  %3063 = vmatprep.mubr.msk.bf16.mxu0 %vm1483_vm0, %v3260_v40  ;;  %v1695_v18 = vmax.f32 %v3671_v1, 0.0  ;;  %v3264_v40 = vld [vmem:[%s4144_s2 + $0x40] sm:$0xff]  }
 0x1fb   : > { %v2651_v5 = vpop.f32.mrf.mxu1 }
 0x1fc   : > { %v3675_v7 = vadd.f32 %v2650_v4, %v3649_v27 }
 0x1fd   : > { %v2652_v16 = vpop.f32.mrf.mxu1 }
 0x1fe   : > { %4255 = vst [vmem:[#allocation36_spill] sm:$0xff] %v3675_v7  ;;  %v1696_v19 = vmax.f32 %v3675_v7, 0.0  ;;  %v2653_v21 = vadd.f32 %v2652_v16, %v2651_v5 }
 0x1ff   : > { %v2654_v23 = vpop.f32.mrf.mxu1 }
 0x200   : > { %v1726_v24 = vpack.c.bf16 %v1696_v19, %v1695_v18  ;;  %v3689_v26 = vadd.f32 %v2653_v21, %v3649_v27  ;;  %v3265_v19 = vld [vmem:[%s4144_s2 + $0x48] sm:$0xff]  }
 0x201   : > { %v2655_v25 = vpop.f32.mrf.mxu1  ;;  %3064 = vmatmul.mubr.msk.bf16.gmra.mxu0 %vm1483_vm0, %v3261_v17 }
 0x202   : > { %4256 = vst [vmem:[#allocation37_spill] sm:$0xff] %v3689_v26  ;;  %v2656_v28 = vadd.f32 %v2655_v25, %v2654_v23  ;;  %3104 = vmatmul.mubr.bf16.vlgmr.msra.gmra.mxu1 %v1726_v24  ;;  %3067 = vmatprep.mubr.msk.bf16.mxu0 %vm1483_vm0, %v3262_v22  ;;  %v1697_v36 = vmax.f32 %v3689_v26, 0.0  ;;  %v3266_v25 = vld [vmem:[%s4144_s2 + $0x50] sm:$0xff]  }
 0x203   : > { %v2657_v29 = vpop.f32.mrf.mxu1 }
 0x204   : > { %v3693_v31 = vadd.f32 %v2656_v28, %v3649_v27 }
 0x205   : > { %v2658_v32 = vpop.f32.mrf.mxu1 }
 0x206   : > { %4257 = vst [vmem:[#allocation38_spill] sm:$0xff] %v3693_v31  ;;  %v1698_v45 = vmax.f32 %v3693_v31, 0.0  ;;  %v2659_v38 = vadd.f32 %v2658_v32, %v2657_v29 }
 0x207   : > { %v2660_v39 = vpop.f32.mrf.mxu1 }
 0x208   : > { %v1727_v61 = vpack.c.bf16 %v1698_v45, %v1697_v36  ;;  %v3707_v4 = vadd.f32 %v2659_v38, %v3649_v27 }
 0x209   : > { %v2661_v0 = vpop.f32.mrf.mxu1  ;;  %3068 = vmatmul.mubr.msk.bf16.gmra.mxu0 %vm1483_vm0, %v3263_v35 }
 0x20a   : > { %4258 = vst [vmem:[#allocation39_spill] sm:$0xff] %v3707_v4  ;;  %v2662_v5 = vadd.f32 %v2661_v0, %v2660_v39  ;;  %3107 = vmatprep.mubr.bf16.mxu1 %v1727_v61  ;;  %3071 = vmatprep.mubr.msk.bf16.mxu0 %vm1483_vm0, %v3264_v40  ;;  %v1699_v21 = vmax.f32 %v3707_v4, 0.0  ;;  %v3267_v39 = vld [vmem:[%s4144_s2 + $0x58] sm:$0xff]  }
 0x20b   : > { %v2663_v16 = vpop.f32.mrf.mxu1 }
 0x20c   : > { %v3711_v17 = vadd.f32 %v2662_v5, %v3649_v27 }
 0x20d   : > { %v2664_v18 = vpop.f32.mrf.mxu1 }
 0x20e   : > { %4259 = vst [vmem:[#allocation40_spill] sm:$0xff] %v3711_v17  ;;  %v1700_v22 = vmax.f32 %v3711_v17, 0.0  ;;  %v2665_v24 = vadd.f32 %v2664_v18, %v2663_v16  ;;  %v3268_v18 = vld [vmem:[%s4144_s2 + $0x60] sm:$0xff]  }
 0x20f   : > { %v2666_v28 = vpop.f32.mrf.mxu1 }
 0x210   : > { %v1728_v29 = vpack.c.bf16 %v1700_v22, %v1699_v21  ;;  %v3725_v35 = vadd.f32 %v2665_v24, %v3649_v27 }
 0x211   : > { %v2667_v32 = vpop.f32.mrf.mxu1  ;;  %3072 = vmatmul.mubr.msk.bf16.gmra.mxu0 %vm1483_vm0, %v3265_v19 }
 0x212   : > { %4260 = vst [vmem:[#allocation41_spill] sm:$0xff] %v3725_v35  ;;  %v2668_v36 = vadd.f32 %v2667_v32, %v2666_v28  ;;  %3108 = vmatmul.mubr.bf16.gmra.mxu1 %v1728_v29  ;;  %3075 = vmatprep.mubr.msk.bf16.mxu0 %vm1483_vm0, %v3266_v25  ;;  %v1701_v61 = vmax.f32 %v3725_v35, 0.0 }
 0x213   : > { %v2669_v45 = vpop.f32.mrf.mxu1 }
 0x214   : > { %v3729_v38 = vadd.f32 %v2668_v36, %v3649_v27  ;;  %v3269_v36 = vld [vmem:[%s4144_s2 + $0x68] sm:$0xff]  }
 0x215   : > { %v2670_v40 = vpop.f32.mrf.mxu1 }
 0x216   : > { %4261 = vst [vmem:[#allocation42_spill] sm:$0xff] %v3729_v38  ;;  %v1702_v0 = vmax.f32 %v3729_v38, 0.0  ;;  %v2671_v16 = vadd.f32 %v2670_v40, %v2669_v45 }
 0x217   : > { %v2672_v19 = vpop.f32.mrf.mxu1 }
 0x218   : > { %v1729_v21 = vpack.c.bf16 %v1702_v0, %v1701_v61  ;;  %v3743_v24 = vadd.f32 %v2671_v16, %v3649_v27  ;;  %v3270_v0 = vld [vmem:[%s4144_s2 + $0x70] sm:$0xff]  }
 0x219   : > { %v2673_v22 = vpop.f32.mrf.mxu1  ;;  %3076 = vmatmul.mubr.msk.bf16.gmra.mxu0 %vm1483_vm0, %v3267_v39 }
 0x21a   : > { %4262 = vst [vmem:[#allocation43_spill] sm:$0xff] %v3743_v24  ;;  %v2674_v25 = vadd.f32 %v2673_v22, %v2672_v19  ;;  %3111 = vmatprep.mubr.bf16.mxu1 %v1729_v21  ;;  %3079 = vmatprep.mubr.msk.bf16.mxu0 %vm1483_vm0, %v3268_v18  ;;  %v1703_v45 = vmax.f32 %v3743_v24, 0.0 }
 0x21b   : > { %v2675_v28 = vpop.f32.mrf.mxu1 }
 0x21c   : > { %v3747_v29 = vadd.f32 %v2674_v25, %v3649_v27 }
 0x21d   : > { %v2676_v32 = vpop.f32.mrf.mxu1 }
 0x21e   : > { %4263 = vst [vmem:[#allocation44_spill] sm:$0xff] %v3747_v29  ;;  %v1704_v40 = vmax.f32 %v3747_v29, 0.0  ;;  %v2677_v61 = vadd.f32 %v2676_v32, %v2675_v28  ;;  %v3271_v32 = vld [vmem:[%s4144_s2 + $0x78] sm:$0xff]  }
 0x21f   : > { %v2678_v16 = vpop.f32.mrf.mxu1 }
 0x220   : > { %v1730_v18 = vpack.c.bf16 %v1704_v40, %v1703_v45  ;;  %v3761_v21 = vadd.f32 %v2677_v61, %v3649_v27 }
 0x221   : > { %v2679_v19 = vpop.f32.mrf.mxu1  ;;  %3080 = vmatmul.mubr.msk.bf16.gmra.mxu0 %vm1483_vm0, %v3269_v36 }
 0x222   : > { %4264 = vst [vmem:[#allocation45_spill] sm:$0xff] %v3761_v21  ;;  %v2680_v22 = vadd.f32 %v2679_v19, %v2678_v16  ;;  %3112 = vmatmul.mubr.bf16.gmra.mxu1 %v1730_v18  ;;  %3083 = vmatprep.mubr.msk.bf16.mxu0 %vm1483_vm0, %v3270_v0  ;;  %v1705_v45 = vmax.f32 %v3761_v21, 0.0 }
 0x223   : > { %v2681_v25 = vpop.f32.mrf.mxu1 }
 0x224   : > { %v3765_v47 = vadd.f32 %v2680_v22, %v3649_v27 }
 0x225   : > { %v2682_v28 = vpop.f32.mrf.mxu1 }
 0x226   : > { %4265 = vst [vmem:[#allocation46_spill] sm:$0xff] %v3765_v47  ;;  %v1706_v36 = vmax.f32 %v3765_v47, 0.0  ;;  %v2683_v61 = vadd.f32 %v2682_v28, %v2681_v25 }
 0x227   : > { %v2684_v16 = vpop.f32.mrf.mxu1 }
 0x228   : > { %v1731_v18 = vpack.c.bf16 %v1706_v36, %v1705_v45  ;;  %v3776_v19 = vadd.f32 %v2683_v61, %v3649_v27 }
 0x229   : > { %v2685_v0 = vpop.f32.mrf.mxu1  ;;  %3084 = vmatmul.mubr.msk.bf16.gmra.mxu0 %vm1483_vm0, %v3271_v32 }
 0x22a   : > { %4266 = vst [vmem:[#allocation47_spill] sm:$0xff] %v3776_v19  ;;  %v2686_v22 = vadd.f32 %v2685_v0, %v2684_v16  ;;  %3115 = vmatprep.mubr.bf16.mxu1 %v1731_v18  ;;  %2021 = vmatprep.mubr.bf16.mxu0 %v3452_v34  ;;  %v1707_v5 = vmax.f32 %v3776_v19, 0.0 }
 0x22b   : > { %v2687_v20 = vpop.f32.mrf.mxu1 }
 0x22c   : > { %v3780_v46 = vadd.f32 %v2686_v22, %v3649_v27 }
 0x22d   : > { %v2688_v23 = vpop.f32.mrf.mxu1 }
 0x22e   : > { %4267 = vst [vmem:[#allocation48_spill] sm:$0xff] %v3780_v46  ;;  %v1708_v25 = vmax.f32 %v3780_v46, 0.0  ;;  %v2689_v32 = vadd.f32 %v2688_v23, %v2687_v20 }
 0x22f   : > { %v2690_v45 = vpop.f32.mrf.mxu1 }
 0x230   : > { %v1732_v36 = vpack.c.bf16 %v1708_v25, %v1707_v5  ;;  %v3787_v16 = vadd.f32 %v2689_v32, %v3649_v27 }
 0x231   : > { %v2691_v61 = vpop.f32.mrf.mxu1 }
 0x232   : > { %4268 = vst [vmem:[#allocation49_spill] sm:$0xff] %v3787_v16  ;;  %v2692_v34 = vadd.f32 %v2691_v61, %v2690_v45  ;;  %3116 = vmatmul.mubr.bf16.gmra.mxu1 %v1732_v36  ;;  %v1709_v39 = vmax.f32 %v3787_v16, 0.0 }
 0x233   : > { %v2693_v18 = vpop.f32.mrf.mxu1 }
 0x234   : > { %v3790_v0 = vadd.f32 %v2692_v34, %v3649_v27 }
 0x235   : > { %v2694_v22 = vpop.f32.mrf.mxu1 }
 0x236   : > { %4269 = vst [vmem:[#allocation50_spill] sm:$0xff] %v3790_v0  ;;  %v1710_v40 = vmax.f32 %v3790_v0, 0.0  ;;  %v2695_v30 = vadd.f32 %v2694_v22, %v2693_v18 }
 0x237   : > { %v2696_v23 = vpop.f32.mrf.mxu1 }
 0x238   : > { %v1733_v5 = vpack.c.bf16 %v1710_v40, %v1709_v39  ;;  %v3797_v32 = vadd.f32 %v2695_v30, %v3649_v27 }
 0x239   : > { %v2697_v25 = vpop.f32.mrf.mxu1 }
 0x23a   : > { %4270 = vst [vmem:[#allocation51_spill] sm:$0xff] %v3797_v32  ;;  %v2698_v45 = vadd.f32 %v2697_v25, %v2696_v23  ;;  %3119 = vmatprep.mubr.bf16.mxu1 %v1733_v5  ;;  %v1711_v28 = vmax.f32 %v3797_v32, 0.0 }
 0x23b   : > { %v2699_v36 = vpop.f32.mrf.mxu1 }
 0x23c   : > { %v3800_v61 = vadd.f32 %v2698_v45, %v3649_v27 }
 0x23d   : > { %v2700_v34 = vpop.f32.mrf.mxu1 }
 0x23e   : > { %4271 = vst [vmem:[#allocation52_spill] sm:$0xff] %v3800_v61  ;;  %v1712_v18 = vmax.f32 %v3800_v61, 0.0  ;;  %v2701_v22 = vadd.f32 %v2700_v34, %v2699_v36 }
 0x23f   : > { %v2702_v39 = vpop.f32.mrf.mxu1 }
 0x240   : > { %v1734_v40 = vpack.c.bf16 %v1712_v18, %v1711_v28  ;;  %v3807_v30 = vadd.f32 %v2701_v22, %v3649_v27 }
 0x241   : > { %v2703_v33 = vpop.f32.mrf.mxu1 }
 0x242   : > { %4272 = vst [vmem:[#allocation53_spill] sm:$0xff] %v3807_v30  ;;  %v2704_v23 = vadd.f32 %v2703_v33, %v2702_v39  ;;  %3120 = vmatmul.mubr.bf16.gmra.mxu1 %v1734_v40  ;;  %v1713_v16 = vmax.f32 %v3807_v30, 0.0 }
 0x243   : > { %v2705_v5 = vpop.f32.mrf.mxu1 }
 0x244   : > { %v3810_v25 = vadd.f32 %v2704_v23, %v3649_v27 }
 0x245   : > { %v2706_v45 = vpop.f32.mrf.mxu1 }
 0x246   : > { %4273 = vst [vmem:[#allocation54_spill] sm:$0xff] %v3810_v25  ;;  %v1714_v36 = vmax.f32 %v3810_v25, 0.0  ;;  %v2707_v34 = vadd.f32 %v2706_v45, %v2705_v5 }
 0x247   : > { %v2708_v28 = vpop.f32.mrf.mxu1 }
 0x248   : > { %v1735_v18 = vpack.c.bf16 %v1714_v36, %v1713_v16  ;;  %v3817_v22 = vadd.f32 %v2707_v34, %v3649_v27 }
 0x249   : > { %v2709_v0 = vpop.f32.mrf.mxu1 }
 0x24a   : > { %4274 = vst [vmem:[#allocation55_spill] sm:$0xff] %v3817_v22  ;;  %v2710_v33 = vadd.f32 %v2709_v0, %v2708_v28  ;;  %3123 = vmatprep.mubr.bf16.mxu1 %v1735_v18  ;;  %v1715_v1 = vmax.f32 %v3817_v22, 0.0 }
 0x24b   : > { %v2711_v39 = vpop.f32.mrf.mxu1 }
 0x24c   : > { %v3820_v40 = vadd.f32 %v2710_v33, %v3649_v27 }
 0x24d   : > { %v2712_v23 = vpop.f32.mrf.mxu1 }
 0x24e   : > { %4275 = vst [vmem:[#allocation56_spill] sm:$0xff] %v3820_v40  ;;  %v1716_v5 = vmax.f32 %v3820_v40, 0.0  ;;  %v2713_v45 = vadd.f32 %v2712_v23, %v2711_v39 }
 0x24f   : > { %v2714_v16 = vpop.f32.mrf.mxu1 }
 0x250   : > { %v1736_v36 = vpack.c.bf16 %v1716_v5, %v1715_v1  ;;  %v3827_v34 = vadd.f32 %v2713_v45, %v3649_v27 }
 0x251   : > { %v2715_v7 = vpop.f32.mrf.mxu1 }
 0x252   : > { %4276 = vst [vmem:[#allocation57_spill] sm:$0xff] %v3827_v34  ;;  %v2716_v0 = vadd.f32 %v2715_v7, %v2714_v16  ;;  %3124 = vmatmul.mubr.bf16.gmra.mxu1 %v1736_v36  ;;  %v1717_v32 = vmax.f32 %v3827_v34, 0.0 }
 0x253   : > { %v2717_v28 = vpop.f32.mrf.mxu1 }
 0x254   : > { %v3830_v18 = vadd.f32 %v2716_v0, %v3649_v27 }
 0x255   : > { %v2718_v33 = vpop.f32.mrf.mxu1 }
 0x256   : > { %4277 = vst [vmem:[#allocation58_spill] sm:$0xff] %v3830_v18  ;;  %v1718_v39 = vmax.f32 %v3830_v18, 0.0  ;;  %v2719_v23 = vadd.f32 %v2718_v33, %v2717_v28 }
 0x257   : > { %v2720_v1 = vpop.f32.mrf.mxu1 }
 0x258   : > { %v1737_v5 = vpack.c.bf16 %v1718_v39, %v1717_v32  ;;  %v3837_v45 = vadd.f32 %v2719_v23, %v3649_v27 }
 0x259   : > { %v2721_v61 = vpop.f32.mrf.mxu1 }
 0x25a   : > { %4278 = vst [vmem:[#allocation59_spill] sm:$0xff] %v3837_v45  ;;  %v2722_v7 = vadd.f32 %v2721_v61, %v2720_v1  ;;  %3127 = vmatprep.mubr.bf16.mxu1 %v1737_v5  ;;  %v1719_v26 = vmax.f32 %v3837_v45, 0.0 }
 0x25b   : > { %v2723_v16 = vpop.f32.mrf.mxu1 }
 0x25c   : > { %v3840_v36 = vadd.f32 %v2722_v7, %v3649_v27 }
 0x25d   : > { %v2724_v0 = vpop.f32.mrf.mxu1 }
 0x25e   : > { %4279 = vst [vmem:[#allocation60_spill] sm:$0xff] %v3840_v36  ;;  %v1720_v28 = vmax.f32 %v3840_v36, 0.0  ;;  %v2725_v33 = vadd.f32 %v2724_v0, %v2723_v16 }
 0x25f   : > { %v2726_v32 = vpop.f32.mrf.mxu1 }
 0x260   : > { %v1738_v39 = vpack.c.bf16 %v1720_v28, %v1719_v26  ;;  %v3847_v23 = vadd.f32 %v2725_v33, %v3649_v27 }
 0x261   : > { %v2727_v31 = vpop.f32.mrf.mxu1 }
 0x262   : > { %4280 = vst [vmem:[#allocation61_spill] sm:$0xff] %v3847_v23  ;;  %v2728_v61 = vadd.f32 %v2727_v31, %v2726_v32  ;;  %3128 = vmatmul.mubr.bf16.gmra.mxu1 %v1738_v39  ;;  %v1721_v30 = vmax.f32 %v3847_v23, 0.0 }
 0x263   : > { %v2729_v1 = vpop.f32.mrf.mxu1 }
 0x264   : > { %v3850_v5 = vadd.f32 %v2728_v61, %v3649_v27 }
 0x265   : > { %v2730_v7 = vpop.f32.mrf.mxu1 }
 0x266   : > { %4281 = vst [vmem:[#allocation62_spill] sm:$0xff] %v3850_v5  ;;  %v1722_v16 = vmax.f32 %v3850_v5, 0.0  ;;  %v2731_v0 = vadd.f32 %v2730_v7, %v2729_v1 }
 0x267   : > { %v2732_v26 = vpop.f32.mrf.mxu1 }
 0x268   : > { %v1739_v28 = vpack.c.bf16 %v1722_v16, %v1721_v30  ;;  %v3857_v33 = vadd.f32 %v2731_v0, %v3649_v27 }
 0x269   : > { %v2733_v25 = vpop.f32.mrf.mxu1 }
 0x26a   : > { %4282 = vst [vmem:[#allocation63_spill] sm:$0xff] %v3857_v33  ;;  %v2734_v31 = vadd.f32 %v2733_v25, %v2732_v26  ;;  %3131 = vmatprep.mubr.bf16.mxu1 %v1739_v28  ;;  %v1723_v39 = vmax.f32 %v3857_v33, 0.0 }
 0x26c   : > { %v3860_v32 = vadd.f32 %v2734_v31, %v3649_v27 }
 0x26e   : > { %4283 = vst [vmem:[#allocation64_spill] sm:$0xff] %v3860_v32  ;;  %v1724_v61 = vmax.f32 %v3860_v32, 0.0 }
 0x270   : > { %v1740_v7 = vpack.c.bf16 %v1724_v61, %v1723_v39 }
 0x272   : > { %3132 = vmatmul.mubr.bf16.gmra.mxu1 %v1740_v7 }
 0x2b1   : > { %v3057_v20 = vpop.f32.mrf.mxu0 }
 0x2b3   : > { %v1566_v30 = vpop.f32.mrf.mxu0 }
 0x2b5   : > { %v3058_v4 = vpop.f32.mrf.mxu0 }
 0x2b7   : > { %v1569_v28 = vpop.f32.mrf.mxu0 }
 0x2b9   : > { %v3061_v39 = vpop.f32.mrf.mxu0 }
 0x2bb   : > { %v1582_v7 = vpop.f32.mrf.mxu0 }
 0x2c2   : > { %v3105_v16 = vpop.f32.mrf.mxu1 }
 0x2c3   : > { %v3866_v0 = vadd.f32 %v3105_v16, %v3057_v20  ;;  %v3062_v16 = vpop.f32.mrf.mxu0 }
 0x2c4   : > { %v1839_v25 = vpop.f32.mrf.mxu1 }
 0x2c5   : > { %4284 = vst [vmem:[#allocation65_spill] sm:$0xff] %v3866_v0  ;;  %v3868_v26 = vadd.f32 %v1839_v25, %v1566_v30 }
 0x2c6   : > { %v3106_v27 = vpop.f32.mrf.mxu1 }
 0x2c7   : > { %4285 = vst [vmem:[#allocation66_spill] sm:$0xff] %v3868_v26  ;;  %v3870_v31 = vadd.f32 %v3106_v27, %v3058_v4  ;;  %v1585_v27 = vpop.f32.mrf.mxu0 }
 0x2c8   : > { %v1842_v17 = vpop.f32.mrf.mxu1 }
 0x2c9   : > { %4286 = vst [vmem:[#allocation67_spill] sm:$0xff] %v3870_v31  ;;  %v3874_v1 = vadd.f32 %v1842_v17, %v1569_v28  ;;  %v3890_v22 = vpop.f32.mrf.mxu0 }
 0x2cb   : > { %4287 = vst [vmem:[#allocation68_spill] sm:$0xff] %v3874_v1 }
 0x2d2   : > { %v3109_v20 = vpop.f32.mrf.mxu1 }
 0x2d3   : > { %v3878_v40 = vadd.f32 %v3109_v20, %v3061_v39  ;;  %v3892_v39 = vpop.f32.mrf.mxu0 }
 0x2d4   : > { %v1855_v30 = vpop.f32.mrf.mxu1 }
 0x2d5   : > { %v3880_v25 = vadd.f32 %v1855_v30, %v1582_v7  ;;  %v3066_v7 = vpop.f32.mrf.mxu0 }
 0x2d6   : > { %v3110_v4 = vpop.f32.mrf.mxu1 }
 0x2d7   : > { %v3882_v35 = vadd.f32 %v3110_v4, %v3062_v16  ;;  %v3898_v16 = vpop.f32.mrf.mxu0 }
 0x2d8   : > { %v1858_v38 = vpop.f32.mrf.mxu1 }
 0x2d9   : > { %v3886_v28 = vadd.f32 %v1858_v38, %v1585_v27  ;;  %v3069_v34 = vpop.f32.mrf.mxu0 }
 0x2db   : > { %v1614_v38 = vpop.f32.mrf.mxu0 }
 0x2dd   : > { %v3070_v17 = vpop.f32.mrf.mxu0 }
 0x2df   : > { %v1617_v61 = vpop.f32.mrf.mxu0 }
 0x2e1   : > { %v3902_v45 = vpop.f32.mrf.mxu0 }
 0x2e2   : > { %v3894_v20 = vpop.f32.mrf.mxu1 }
 0x2e3   : > { %v3904_v21 = vpop.f32.mrf.mxu0 }
 0x2e4   : > { %v3896_v30 = vpop.f32.mrf.mxu1  ;;  %4288 = vst [vmem:[#allocation69_spill] sm:$0xff] %v3904_v21 }
 0x2e5   : > { %v3908_v23 = vpop.f32.mrf.mxu0 }
 0x2e6   : > { %v3114_v4 = vpop.f32.mrf.mxu1 }
 0x2e7   : > { %v3912_v19 = vpop.f32.mrf.mxu0  ;;  %v1883_v21 = vadd.f32 %v3114_v4, %v3066_v7  ;;  %v4326_v7 = vld [vmem:[#allocation28_spill] sm:$0xff]  ;;  %v4329_v4 = vld [vmem:[#allocation31_spill] sm:$0xff] }
 0x2e8   : > { %v3900_v18 = vpop.f32.mrf.mxu1 }
 0x2e9   : > { %v3077_v33 = vpop.f32.mrf.mxu0 }
 0x2eb   : > { %v1646_v15 = vpop.f32.mrf.mxu0 }
 0x2ed   : > { %v3078_v13 = vpop.f32.mrf.mxu0 }
 0x2ef   : > { %v1649_v11 = vpop.f32.mrf.mxu0 }
 0x2f1   : > { %v3081_v9 = vpop.f32.mrf.mxu0 }
 0x2f2   : > { %v3117_v27 = vpop.f32.mrf.mxu1 }
 0x2f3   : > { %v1662_v6 = vpop.f32.mrf.mxu0  ;;  %v1896_v49 = vadd.f32 %v3117_v27, %v3069_v34  ;;  %v4309_v34 = vld [vmem:[#allocation11_spill] sm:$0xff] }
 0x2f4   : > { %v1887_v24 = vpop.f32.mrf.mxu1 }
 0x2f5   : > { %v3082_v2 = vpop.f32.mrf.mxu0  ;;  %v1888_v31 = vadd.f32 %v1887_v24, %v1614_v38  ;;  %v4304_v24 = vld [vmem:[#allocation6_spill] sm:$0xff]  ;;  %v4330_v38 = vld [vmem:[#allocation32_spill] sm:$0xff] }
 0x2f6   : > { %v3118_v29 = vpop.f32.mrf.mxu1 }
 0x2f7   : > { %v1665_v62 = vpop.f32.mrf.mxu0  ;;  %v1899_v53 = vadd.f32 %v3118_v29, %v3070_v17 }
 0x2f8   : > { %v1890_v36 = vpop.f32.mrf.mxu1 }
 0x2f9   : > { %v3085_v59 = vpop.f32.mrf.mxu0  ;;  %v1973_v42 = vpack.c.bf16 %v1899_v53, %v1896_v49  ;;  %v1891_v26 = vadd.f32 %v1890_v36, %v1617_v61  ;;  %v4312_v36 = vld [vmem:[#allocation14_spill] sm:$0xff]  ;;  %v4321_v61 = vld [vmem:[#allocation23_spill] sm:$0xff] }
 0x2fb   : > { %v1678_v57 = vpop.f32.mrf.mxu0  ;;  %v1972_v29 = vpack.c.bf16 %v1891_v26, %v1888_v31  ;;  %v4319_v26 = vld [vmem:[#allocation21_spill] sm:$0xff]  ;;  %v4320_v31 = vld [vmem:[#allocation22_spill] sm:$0xff] }
 0x2fd   : > { %v3086_v55 = vpop.f32.mrf.mxu0 }
 0x2ff   : > { %v1681_v48 = vpop.f32.mrf.mxu0 }
 0x302   : > { %v3906_v47 = vpop.f32.mrf.mxu1 }
 0x304   : > { %v3910_v5 = vpop.f32.mrf.mxu1 }
 0x305   : > { %4289 = vst [vmem:[#allocation70_spill] sm:$0xff] %v3910_v5 }
 0x306   : > { %v3914_v46 = vpop.f32.mrf.mxu1 }
 0x308   : > { %v3916_v32 = vpop.f32.mrf.mxu1 }
 0x312   : > { %v3125_v14 = vpop.f32.mrf.mxu1 }
 0x314   : > { %v1919_v12 = vpop.f32.mrf.mxu1 }
 0x315   : > { %v1920_v53 = vadd.f32 %v1919_v12, %v1646_v15  ;;  %v4297_v12 = vld [vmem:[#allocation68_spill] sm:$0xff]  ;;  %v4300_v15 = vld [vmem:[#allocation2_spill] sm:$0xff] }
 0x316   : > { %v3126_v10 = vpop.f32.mrf.mxu1 }
 0x318   : > { %v1922_v8 = vpop.f32.mrf.mxu1 }
 0x322   : > { %v3129_v3 = vpop.f32.mrf.mxu1 }
 0x323   : > { %v1944_v5 = vadd.f32 %v3129_v3, %v3081_v9  ;;  %v4293_v3 = vld [vmem:[#allocation70_spill] sm:$0xff]  ;;  %v4294_v9 = vld [vmem:[#allocation67_spill] sm:$0xff] }
 0x324   : > { %v1935_v63 = vpop.f32.mrf.mxu1 }
 0x326   : > { %v3130_v60 = vpop.f32.mrf.mxu1 }
 0x327   : > { %v1947_v1 = vadd.f32 %v3130_v60, %v3082_v2  ;;  %v4292_v2 = vld [vmem:[#allocation69_spill] sm:$0xff] }
 0x328   : > { %v1938_v58 = vpop.f32.mrf.mxu1 }
 0x329   : > { %v1979_v17 = vpack.c.bf16 %v1947_v1, %v1944_v5  ;;  %v4314_v5 = vld [vmem:[#allocation16_spill] sm:$0xff]  ;;  %v4317_v1 = vld [vmem:[#allocation19_spill] sm:$0xff] }
 0x332   : > { %v3133_v56 = vpop.f32.mrf.mxu1 }
 0x333   : > { %v1960_v51 = vadd.f32 %v3133_v56, %v3085_v59  ;;  %v1939_v56 = vadd.f32 %v1938_v58, %v1665_v62  ;;  %v4290_v58 = vpack.c.bf16 %v3882_v35, %v3878_v40  ;;  %v1912_v59 = vadd.f32 %v3906_v47, %v3902_v45  ;;  %v4301_v47 = vld [vmem:[#allocation3_spill] sm:$0xff]  ;;  %v4303_v35 = vld [vmem:[#allocation5_spill] sm:$0xff]  ;;  %v4308_v40 = vld [vmem:[#allocation10_spill] sm:$0xff] }
 0x334   : > { %v1951_v54 = vpop.f32.mrf.mxu1  ;;  %v1907_v62 = vadd.f32 %v3916_v32, %v3912_v19  ;;  %v4306_v19 = vld [vmem:[#allocation8_spill] sm:$0xff]  ;;  %v4311_v45 = vld [vmem:[#allocation13_spill] sm:$0xff]  ;;  %v4316_v32 = vld [vmem:[#allocation18_spill] sm:$0xff] }
 0x335   : > { %v1952_v43 = vadd.f32 %v1951_v54, %v1678_v57  ;;  %v1936_v54 = vadd.f32 %v1935_v63, %v1662_v6  ;;  %v4291_v63 = vpack.c.bf16 %v3886_v28, %v3880_v25  ;;  %v1904_v6 = vadd.f32 %v4293_v3, %v4292_v2  ;;  %v4322_v25 = vld [vmem:[#allocation24_spill] sm:$0xff]  ;;  %v4323_v28 = vld [vmem:[#allocation25_spill] sm:$0xff] }
 0x336   : > { %v3134_v52 = vpop.f32.mrf.mxu1 }
 0x337   : > { %v1963_v50 = vadd.f32 %v3134_v52, %v3086_v55  ;;  %v1880_v52 = vadd.f32 %v3894_v20, %v3890_v22  ;;  %v1915_v55 = vadd.f32 %v3914_v46, %v3908_v23  ;;  %v4302_v46 = vld [vmem:[#allocation4_spill] sm:$0xff]  ;;  %v4307_v22 = vld [vmem:[#allocation9_spill] sm:$0xff]  ;;  %v4313_v23 = vld [vmem:[#allocation15_spill] sm:$0xff] }
 0x338   : > { %v1954_v44 = vpop.f32.mrf.mxu1  ;;  %v4325_v20 = vld [vmem:[#allocation27_spill] sm:$0xff] }
 0x339   : > { %v1981_v41 = vpack.c.bf16 %v1963_v50, %v1960_v51  ;;  %v1955_v37 = vadd.f32 %v1954_v44, %v1681_v48  ;;  %v1971_v44 = vpack.c.bf16 %v1883_v21, %v1880_v52  ;;  %v1875_v48 = vadd.f32 %v3900_v18, %v3898_v16  ;;  %v4305_v21 = vld [vmem:[#allocation7_spill] sm:$0xff]  ;;  %v4310_v18 = vld [vmem:[#allocation12_spill] sm:$0xff]  ;;  %v4328_v16 = vld [vmem:[#allocation30_spill] sm:$0xff] }
 0x33a   : > { %v1923_v51 = vadd.f32 %v1922_v8, %v1649_v11  ;;  %v1975_v60 = vpack.c.bf16 %v1915_v55, %v1912_v59  ;;  %v1974_v8 = vpack.c.bf16 %v1907_v62, %v1904_v6 }
 0x33b   : > { %v1980_v0 = vpack.c.bf16 %v1955_v37, %v1952_v43  ;;  %2815 = vmatprep.subr.bf16.mxu0 %v1981_v41  ;;  %v1931_v37 = vadd.f32 %v3126_v10, %v3078_v13  ;;  %v1978_v41 = vpack.c.bf16 %v1939_v56, %v1936_v54  ;;  %v1928_v43 = vadd.f32 %v3125_v14, %v3077_v33  ;;  %v4295_v10 = vld [vmem:[#allocation65_spill] sm:$0xff]  ;;  %v4298_v13 = vld [vmem:[#allocation66_spill] sm:$0xff] }
 0x33c   : > { %2816 = vmatpush3.bf16.msra.mxu0 %v1973_v42  ;;  %v1872_v42 = vadd.f32 %v3896_v30, %v3892_v39  ;;  %v1976_v57 = vpack.c.bf16 %v1923_v51, %v1920_v53  ;;  %v4296_v11 = vpack.c.bf16 %v4294_v9, %v4295_v10  ;;  %v4299_v14 = vpack.c.bf16 %v4297_v12, %v4298_v13  ;;  %v4315_v33 = vld [vmem:[#allocation17_spill] sm:$0xff]  ;;  %v4324_v39 = vld [vmem:[#allocation26_spill] sm:$0xff] }
 0x33d   : > { %2817 = vmatprep.subr.bf16.mxu0 %v1980_v0  ;;  %v1977_v50 = vpack.c.bf16 %v1931_v37, %v1928_v43  ;;  %v4318_v0 = vld [vmem:[#allocation20_spill] sm:$0xff]  ;;  %v4327_v30 = vld [vmem:[#allocation29_spill] sm:$0xff]  ;;  %v3978_v56 = vld [vmem:[%s4152_s10] ss:$0 sm:$0xff] }
 0x33e   : > { %v1970_v49 = vpack.c.bf16 %v1875_v48, %v1872_v42 }
 0x340   : > { %2818 = vmatpush3.bf16.msra.mxu0 %v1972_v29 }
 0x341   : > { %2819 = vmatprep.subr.bf16.mxu0 %v1979_v17 }
 0x344   : > { %2820 = vmatpush3.bf16.msra.mxu0 %v1971_v44 }
 0x345   : > { %2821 = vmatprep.subr.bf16.mxu0 %v1978_v41 }
 0x348   : > { %2822 = vmatpush3.bf16.msra.mxu0 %v1970_v49 }
 0x349   : > { %2823 = vmatprep.subr.bf16.mxu0 %v1977_v50 }
 0x34c   : > { %2824 = vmatpush3.bf16.msra.mxu0 %v4290_v58 }
 0x34d   : > { %2825 = vmatprep.subr.bf16.mxu0 %v1976_v57 }
 0x350   : > { %2826 = vmatpush3.bf16.msra.mxu0 %v4291_v63 }
 0x351   : > { %2827 = vmatprep.subr.bf16.mxu0 %v1975_v60 }
 0x354   : > { %2828 = vmatpush3.bf16.msra.mxu0 %v4296_v11 }
 0x355   : > { %2829 = vmatprep.subr.bf16.mxu0 %v1974_v8 }
 0x358   : > { %2830 = vmatpush3.bf16.msra.mxu0 %v4299_v14 }
 0x35b   : > { %2022 = vmatmul.mubr.bf16.vlgmr.msra.gmra.mxu0 %v4300_v15 }
 0x35c   : > { %2029 = vmatprep.mubr.bf16.mxu0 %v4301_v47 }
 0x363   : > { %2030 = vmatmul.mubr.bf16.gmra.mxu0 %v4302_v46 }
 0x364   : > { %2037 = vmatprep.mubr.bf16.mxu0 %v4303_v35 }
 0x36b   : > { %2038 = vmatmul.mubr.bf16.gmra.mxu0 %v4304_v24 }
 0x36c   : > { %2045 = vmatprep.mubr.bf16.mxu0 %v4305_v21 }
 0x373   : > { %2046 = vmatmul.mubr.bf16.gmra.mxu0 %v4306_v19 }
 0x374   : > { %2053 = vmatprep.mubr.bf16.mxu0 %v4307_v22 }
 0x37b   : > { %2054 = vmatmul.mubr.bf16.gmra.mxu0 %v4308_v40 }
 0x37c   : > { %2061 = vmatprep.mubr.bf16.mxu0 %v4309_v34 }
 0x383   : > { %2062 = vmatmul.mubr.bf16.gmra.mxu0 %v4310_v18 }
 0x384   : > { %2069 = vmatprep.mubr.bf16.mxu0 %v4311_v45 }
 0x38b   : > { %2070 = vmatmul.mubr.bf16.gmra.mxu0 %v4312_v36 }
 0x38c   : > { %2077 = vmatprep.mubr.bf16.mxu0 %v4313_v23 }
 0x393   : > { %2078 = vmatmul.mubr.bf16.gmra.mxu0 %v4314_v5 }
 0x394   : > { %2085 = vmatprep.mubr.bf16.mxu0 %v4315_v33  ;;  %v3274_v33 = vld [vmem:[%s4000_s20 + $0x4] ss:$8 sps:$4 sm:$0xff]  }
 0x395   : > { %2254 = vmatprep.mubr.bf16.mxu1 %v3274_v33 }
 0x39b   : > { %2086 = vmatmul.mubr.bf16.gmra.mxu0 %v4316_v32 }
 0x39c   : > { %2093 = vmatprep.mubr.bf16.mxu0 %v4317_v1 }
 0x3a3   : > { %2094 = vmatmul.mubr.bf16.gmra.mxu0 %v4318_v0 }
 0x3a4   : > { %2101 = vmatprep.mubr.bf16.mxu0 %v4319_v26 }
 0x3ab   : > { %2102 = vmatmul.mubr.bf16.gmra.mxu0 %v4320_v31 }
 0x3ac   : > { %2109 = vmatprep.mubr.bf16.mxu0 %v4321_v61 }
 0x3b3   : > { %2110 = vmatmul.mubr.bf16.gmra.mxu0 %v4322_v25 }
 0x3b4   : > { %2117 = vmatprep.mubr.bf16.mxu0 %v4323_v28 }
 0x3bb   : > { %2118 = vmatmul.mubr.bf16.gmra.mxu0 %v4324_v39 }
 0x3bc   : > { %2125 = vmatprep.mubr.bf16.mxu0 %v4325_v20 }
 0x3c3   : > { %2126 = vmatmul.mubr.bf16.gmra.mxu0 %v4326_v7 }
 0x3c4   : > { %2133 = vmatprep.mubr.bf16.mxu0 %v4327_v30 }
 0x3cb   : > { %2134 = vmatmul.mubr.bf16.gmra.mxu0 %v4328_v16 }
 0x3cc   : > { %2141 = vmatprep.mubr.bf16.mxu0 %v4329_v4 }
 0x3d3   : > { %2142 = vmatmul.mubr.bf16.gmra.mxu0 %v4330_v38 }
 0x41b   : > { %v2831_v27 = vpop.f32.mrf.mxu0 }
 0x41d   : > { %v2832_v29 = vpop.f32.mrf.mxu0 }
 0x41e   : > { %v2833_v17 = vadd.f32 %v2832_v29, %v2831_v27 }
 0x41f   : > { %v2834_v52 = vpop.f32.mrf.mxu0 }
 0x420   : > { %v2024_v44 = vadd.f32 %v2833_v17, %v3978_v56 }
 0x421   : > { %v2835_v54 = vpop.f32.mrf.mxu0 }
 0x422   : > { %v2836_v48 = vadd.f32 %v2835_v54, %v2834_v52  ;;  %v2150_v43 = vmax.f32 %v2024_v44, 0.0 }
 0x423   : > { %v2837_v37 = vpop.f32.mrf.mxu0 }
 0x424   : > { %v2027_v41 = vadd.f32 %v2836_v48, %v3978_v56 }
 0x425   : > { %v2838_v42 = vpop.f32.mrf.mxu0 }
 0x426   : > { %v2151_v49 = vmax.f32 %v2027_v41, 0.0  ;;  %v2839_v50 = vadd.f32 %v2838_v42, %v2837_v37 }
 0x427   : > { %v2840_v51 = vpop.f32.mrf.mxu0 }
 0x428   : > { %v3982_v53 = vpack.c.bf16 %v2151_v49, %v2150_v43  ;;  %v2032_v57 = vadd.f32 %v2839_v50, %v3978_v56 }
 0x429   : > { %v2841_v55 = vpop.f32.mrf.mxu0 }
 0x42a   : > { %v2842_v58 = vadd.f32 %v2841_v55, %v2840_v51  ;;  %v2152_v63 = vmax.f32 %v2032_v57, 0.0 }
 0x42b   : > { %v2843_v59 = vpop.f32.mrf.mxu0 }
 0x42c   : > { %v2035_v60 = vadd.f32 %v2842_v58, %v3978_v56 }
 0x42d   : > { %v2844_v62 = vpop.f32.mrf.mxu0 }
 0x42e   : > { %v2153_v2 = vmax.f32 %v2035_v60, 0.0  ;;  %v2845_v3 = vadd.f32 %v2844_v62, %v2843_v59 }
 0x42f   : > { %v2846_v6 = vpop.f32.mrf.mxu0 }
 0x430   : > { %v3986_v8 = vpack.c.bf16 %v2153_v2, %v2152_v63  ;;  %v2040_v10 = vadd.f32 %v2845_v3, %v3978_v56 }
 0x431   : > { %v2847_v9 = vpop.f32.mrf.mxu0 }
 0x432   : > { %v2848_v11 = vadd.f32 %v2847_v9, %v2846_v6  ;;  %v2154_v15 = vmax.f32 %v2040_v10, 0.0 }
 0x433   : > { %v2849_v12 = vpop.f32.mrf.mxu0 }
 0x434   : > { %v2043_v13 = vadd.f32 %v2848_v11, %v3978_v56 }
 0x435   : > { %v2850_v14 = vpop.f32.mrf.mxu0 }
 0x436   : > { %v2155_v47 = vmax.f32 %v2043_v13, 0.0  ;;  %v2851_v46 = vadd.f32 %v2850_v14, %v2849_v12 }
 0x437   : > { %v2852_v35 = vpop.f32.mrf.mxu0 }
 0x438   : > { %v3990_v24 = vpack.c.bf16 %v2155_v47, %v2154_v15  ;;  %v2048_v19 = vadd.f32 %v2851_v46, %v3978_v56 }
 0x439   : > { %v2853_v21 = vpop.f32.mrf.mxu0 }
 0x43a   : > { %v2854_v22 = vadd.f32 %v2853_v21, %v2852_v35  ;;  %v2156_v45 = vmax.f32 %v2048_v19, 0.0 }
 0x43b   : > { %v2855_v40 = vpop.f32.mrf.mxu0 }
 0x43c   : > { %v2051_v34 = vadd.f32 %v2854_v22, %v3978_v56 }
 0x43d   : > { %v2856_v18 = vpop.f32.mrf.mxu0 }
 0x43e   : > { %v2157_v36 = vmax.f32 %v2051_v34, 0.0  ;;  %v2857_v23 = vadd.f32 %v2856_v18, %v2855_v40 }
 0x43f   : > { %v2858_v5 = vpop.f32.mrf.mxu0 }
 0x440   : > { %v4003_v32 = vpack.c.bf16 %v2157_v36, %v2156_v45  ;;  %v2056_v0 = vadd.f32 %v2857_v23, %v3978_v56 }
 0x441   : > { %v2859_v1 = vpop.f32.mrf.mxu0 }
 0x442   : > { %v2860_v26 = vadd.f32 %v2859_v1, %v2858_v5  ;;  %v2158_v28 = vmax.f32 %v2056_v0, 0.0  ;;  %v3290_v1 = vmov 0   ;;  %v2271_v0 = vld [vmem:[%s441_s23] sm:$0xff] }
 0x443   : > { %v2861_v31 = vpop.f32.mrf.mxu0  ;;  %3160 = vset.pattern.permute.xlu0 %v3290_v1  ;;  %3161 = vset.pattern.permute.xlu1 %v3290_v1 }
 0x444   : > { %v2059_v61 = vadd.f32 %v2860_v26, %v3978_v56  ;;  %v2273_v26 = vld [vmem:[%s441_s23 + $0x10] sm:$0xff]  ;;  %2277 = vperm.xlu0 %3160, %v2271_v0  }
 0x445   : > { %v2862_v25 = vpop.f32.mrf.mxu0  ;;  %2287 = vperm.xlu1 %3161, %v2273_v26  }
 0x446   : > { %v2159_v39 = vmax.f32 %v2059_v61, 0.0  ;;  %v2863_v20 = vadd.f32 %v2862_v25, %v2861_v31  ;;  %v2272_v25 = vld [vmem:[%s441_s23 + $0x8] sm:$0xff] }
 0x447   : > { %v2864_v7 = vpop.f32.mrf.mxu0 }
 0x448   : > { %v4007_v30 = vpack.c.bf16 %v2159_v39, %v2158_v28  ;;  %v2064_v4 = vadd.f32 %v2863_v20, %v3978_v56  ;;  %v2274_v28 = vld [vmem:[%s441_s23 + $0x18] sm:$0xff]  ;;  %2282 = vperm.xlu0 %3160, %v2272_v25  }
 0x449   : > { %v2865_v16 = vpop.f32.mrf.mxu0  ;;  %2292 = vperm.xlu1 %3161, %v2274_v28  }
 0x44a   : > { %v2866_v38 = vadd.f32 %v2865_v16, %v2864_v7  ;;  %v2160_v52 = vmax.f32 %v2064_v4, 0.0 }
 0x44b   : > { %v2867_v27 = vpop.f32.mrf.mxu0 }
 0x44c   : > { %v2067_v29 = vadd.f32 %v2866_v38, %v3978_v56 }
 0x44d   : > { %v2868_v17 = vpop.f32.mrf.mxu0 }
 0x44e   : > { %v2161_v54 = vmax.f32 %v2067_v29, 0.0  ;;  %v2869_v44 = vadd.f32 %v2868_v17, %v2867_v27 }
 0x44f   : > { %v2870_v48 = vpop.f32.mrf.mxu0 }
 0x450   : > { %v4011_v37 = vpack.c.bf16 %v2161_v54, %v2160_v52  ;;  %v2072_v42 = vadd.f32 %v2869_v44, %v3978_v56 }
 0x451   : > { %v2871_v41 = vpop.f32.mrf.mxu0 }
 0x452   : > { %v2872_v43 = vadd.f32 %v2871_v41, %v2870_v48  ;;  %v2162_v55 = vmax.f32 %v2072_v42, 0.0 }
 0x453   : > { %v2873_v49 = vpop.f32.mrf.mxu0 }
 0x454   : > { %v2075_v50 = vadd.f32 %v2872_v43, %v3978_v56 }
 0x455   : > { %v2874_v51 = vpop.f32.mrf.mxu0 }
 0x456   : > { %v2163_v57 = vmax.f32 %v2075_v50, 0.0  ;;  %v2875_v58 = vadd.f32 %v2874_v51, %v2873_v49 }
 0x457   : > { %v2876_v59 = vpop.f32.mrf.mxu0 }
 0x458   : > { %v4015_v60 = vpack.c.bf16 %v2163_v57, %v2162_v55  ;;  %v2080_v63 = vadd.f32 %v2875_v58, %v3978_v56 }
 0x459   : > { %v2877_v62 = vpop.f32.mrf.mxu0 }
 0x45a   : > { %v2878_v2 = vadd.f32 %v2877_v62, %v2876_v59  ;;  %v2164_v10 = vmax.f32 %v2080_v63, 0.0 }
 0x45b   : > { %v2879_v3 = vpop.f32.mrf.mxu0 }
 0x45c   : > { %v2083_v6 = vadd.f32 %v2878_v2, %v3978_v56 }
 0x45d   : > { %v2880_v9 = vpop.f32.mrf.mxu0 }
 0x45e   : > { %v2165_v11 = vmax.f32 %v2083_v6, 0.0  ;;  %v2881_v12 = vadd.f32 %v2880_v9, %v2879_v3 }
 0x45f   : > { %v2882_v13 = vpop.f32.mrf.mxu0 }
 0x460   : > { %v4019_v14 = vpack.c.bf16 %v2165_v11, %v2164_v10  ;;  %v2088_v47 = vadd.f32 %v2881_v12, %v3978_v56 }
 0x461   : > { %v2883_v15 = vpop.f32.mrf.mxu0 }
 0x462   : > { %v2884_v46 = vadd.f32 %v2883_v15, %v2882_v13  ;;  %v2166_v22 = vmax.f32 %v2088_v47, 0.0 }
 0x463   : > { %v2885_v35 = vpop.f32.mrf.mxu0 }
 0x464   : > { %v2091_v21 = vadd.f32 %v2884_v46, %v3978_v56 }
 0x465   : > { %v2886_v19 = vpop.f32.mrf.mxu0 }
 0x466   : > { %v2167_v40 = vmax.f32 %v2091_v21, 0.0  ;;  %v2887_v34 = vadd.f32 %v2886_v19, %v2885_v35 }
 0x467   : > { %v2888_v18 = vpop.f32.mrf.mxu0 }
 0x468   : > { %v4023_v45 = vpack.c.bf16 %v2167_v40, %v2166_v22  ;;  %v2096_v23 = vadd.f32 %v2887_v34, %v3978_v56 }
 0x469   : > { %v2889_v36 = vpop.f32.mrf.mxu0 }
 0x46a   : > { %v2890_v5 = vadd.f32 %v2889_v36, %v2888_v18  ;;  %v2168_v39 = vmax.f32 %v2096_v23, 0.0 }
 0x46b   : > { %v4031_v33 = vpop.f32.mrf.mxu0 }
 0x46c   : > { %v2099_v31 = vadd.f32 %v2890_v5, %v3978_v56 }
 0x46d   : > { %v4034_v61 = vpop.f32.mrf.mxu0 }
 0x46e   : > { %v2169_v20 = vmax.f32 %v2099_v31, 0.0 }
 0x46f   : > { %v2894_v7 = vpop.f32.mrf.mxu0 }
 0x470   : > { %v4036_v16 = vpack.c.bf16 %v2169_v20, %v2168_v39 }
 0x471   : > { %v2895_v4 = vpop.f32.mrf.mxu0 }
 0x472   : > { %v2896_v28 = vadd.f32 %v2895_v4, %v2894_v7 }
 0x473   : > { %v2897_v38 = vpop.f32.mrf.mxu0 }
 0x475   : > { %v2898_v27 = vpop.f32.mrf.mxu0 }
 0x476   : > { %v2899_v26 = vadd.f32 %v2898_v27, %v2897_v38 }
 0x477   : > { %v2900_v29 = vpop.f32.mrf.mxu0 }
 0x479   : > { %v2901_v17 = vpop.f32.mrf.mxu0 }
 0x47a   : > { %v2902_v23 = vadd.f32 %v2901_v17, %v2900_v29  ;;  %v2893_v29 = vadd.f32 %v4034_v61, %v4031_v33  ;;  %v2112_v17 = vadd.f32 %v2899_v26, %v3978_v56 }
 0x47b   : > { %v2903_v52 = vpop.f32.mrf.mxu0 }
 0x47c   : > { %v2115_v39 = vadd.f32 %v2902_v23, %v3978_v56  ;;  %v2104_v7 = vadd.f32 %v2893_v29, %v3978_v56  ;;  %v2172_v4 = vmax.f32 %v2112_v17, 0.0  ;;  %v4368_v23 = vld [vmem:[#allocation51_spill] sm:$0xff]  ;;  %v3280_v17 = vld [vmem:[%s4146_s4 + $0x14] ss:$8 sps:$4 sm:$0xff]  }
 0x47d   : > { %v2904_v54 = vpop.f32.mrf.mxu0  ;;  %v3279_v29 = vld [vmem:[%s4146_s4] ss:$8 sps:$4 sm:$0xff]  }
 0x47e   : > { %v2905_v40 = vadd.f32 %v2904_v54, %v2903_v52  ;;  %v2173_v38 = vmax.f32 %v2115_v39, 0.0  ;;  %v2170_v33 = vmax.f32 %v2104_v7, 0.0  ;;  %v4376_v39 = vld [vmem:[#allocation34_spill] sm:$0xff] }
 0x47f   : > { %v2906_v44 = vpop.f32.mrf.mxu0 }
 0x480   : > { %v2120_v31 = vadd.f32 %v2905_v40, %v3978_v56  ;;  %v4364_v40 = vld [vmem:[#allocation38_spill] sm:$0xff] }
 0x481   : > { %v2907_v48 = vpop.f32.mrf.mxu0 }
 0x482   : > { %v2908_v46 = vadd.f32 %v2907_v48, %v2906_v44  ;;  %v2174_v54 = vmax.f32 %v2120_v31, 0.0  ;;  %v2197_v44 = vpack.c.bf16 %v2173_v38, %v2172_v4  ;;  %v4332_v48 = vld [vmem:[#allocation63_spill] sm:$0xff]  ;;  %v4373_v31 = vld [vmem:[#allocation50_spill] sm:$0xff] }
 0x483   : > { %v2909_v41 = vpop.f32.mrf.mxu0 }
 0x484   : > { %v2123_v5 = vadd.f32 %v2908_v46, %v3978_v56  ;;  %v4359_v46 = vld [vmem:[#allocation39_spill] sm:$0xff] }
 0x485   : > { %v2910_v42 = vpop.f32.mrf.mxu0 }
 0x486   : > { %v2911_v13 = vadd.f32 %v2910_v42, %v2909_v41  ;;  %v2175_v20 = vmax.f32 %v2123_v5, 0.0  ;;  %v4334_v42 = vld [vmem:[#allocation48_spill] sm:$0xff] }
 0x487   : > { %v2912_v43 = vpop.f32.mrf.mxu0 }
 0x488   : > { %v2128_v34 = vadd.f32 %v2911_v13, %v3978_v56  ;;  %v2198_v27 = vpack.c.bf16 %v2175_v20, %v2174_v54  ;;  %v4356_v13 = vld [vmem:[#allocation55_spill] sm:$0xff]  ;;  %v4377_v20 = vld [vmem:[#allocation33_spill] sm:$0xff] }
 0x489   : > { %v2913_v49 = vpop.f32.mrf.mxu0  ;;  %v3281_v54 = vld [vmem:[%s4146_s4 + $0x10] ss:$8 sps:$4 sm:$0xff]  }
 0x48a   : > { %v2914_v9 = vadd.f32 %v2913_v49, %v2912_v43  ;;  %v2176_v25 = vmax.f32 %v2128_v34, 0.0  ;;  %v4365_v34 = vld [vmem:[#allocation37_spill] sm:$0xff] }
 0x48b   : > { %v2915_v50 = vpop.f32.mrf.mxu0 }
 0x48c   : > { %v2131_v35 = vadd.f32 %v2914_v9, %v3978_v56  ;;  %v4352_v9 = vld [vmem:[#allocation42_spill] sm:$0xff] }
 0x48d   : > { %v2916_v51 = vpop.f32.mrf.mxu0 }
 0x48e   : > { %v2917_v3 = vadd.f32 %v2916_v51, %v2915_v50  ;;  %v2177_v1 = vmax.f32 %v2131_v35, 0.0  ;;  %v4341_v50 = vld [vmem:[#allocation45_spill] sm:$0xff] }
 0x48f   : > { %v2918_v55 = vpop.f32.mrf.mxu0 }
 0x490   : > { %v2136_v15 = vadd.f32 %v2917_v3, %v3978_v56  ;;  %v2199_v52 = vpack.c.bf16 %v2177_v1, %v2176_v25  ;;  %v4350_v3 = vld [vmem:[#allocation57_spill] sm:$0xff]  ;;  %v4370_v1 = vld [vmem:[#allocation36_spill] sm:$0xff] }
 0x491   : > { %v2919_v57 = vpop.f32.mrf.mxu0  ;;  %v4374_v25 = vld [vmem:[#allocation49_spill] sm:$0xff] }
 0x492   : > { %v2920_v62 = vadd.f32 %v2919_v57, %v2918_v55  ;;  %v2178_v18 = vmax.f32 %v2136_v15, 0.0  ;;  %v4344_v55 = vld [vmem:[#allocation59_spill] sm:$0xff] }
 0x493   : > { %v2921_v58 = vpop.f32.mrf.mxu0 }
 0x494   : > { %v2139_v10 = vadd.f32 %v2920_v62, %v3978_v56 }
 0x495   : > { %v2922_v59 = vpop.f32.mrf.mxu0 }
 0x496   : > { %v2923_v63 = vadd.f32 %v2922_v59, %v2921_v58  ;;  %v2179_v21 = vmax.f32 %v2139_v10, 0.0  ;;  %v4346_v58 = vld [vmem:[#allocation44_spill] sm:$0xff]  ;;  %v4347_v59 = vld [vmem:[#allocation43_spill] sm:$0xff]  ;;  %v4353_v10 = vld [vmem:[#allocation41_spill] sm:$0xff] }
 0x497   : > { %v2924_v2 = vpop.f32.mrf.mxu0  ;;  %v4348_v62 = vpack.c.bf16 %v4346_v58, %v4347_v59 }
 0x498   : > { %v2144_v11 = vadd.f32 %v2923_v63, %v3978_v56  ;;  %v2200_v0 = vpack.c.bf16 %v2179_v21, %v2178_v18  ;;  %v3278_v63 = vld [vmem:[%s4146_s4 + $0x4] ss:$8 sps:$4 sm:$0xff]   ;;  %v4366_v18 = vpack.c.bf16 %v4364_v40, %v4365_v34 }
 0x499   : > { %v2925_v6 = vpop.f32.mrf.mxu0  ;;  %v4361_v21 = vld [vmem:[#allocation54_spill] sm:$0xff] }
 0x49a   : > { %v2926_v12 = vadd.f32 %v2925_v6, %v2924_v2  ;;  %v2180_v19 = vmax.f32 %v2144_v11, 0.0  ;;  %v4349_v2 = vld [vmem:[#allocation58_spill] sm:$0xff]  ;;  %v4354_v11 = vpack.c.bf16 %v4352_v9, %v4353_v10 }
 0x49b   : > { %v4351_v6 = vpack.c.bf16 %v4349_v2, %v4350_v3 }
 0x49c   : > { %v2147_v47 = vadd.f32 %v2926_v12, %v3978_v56  ;;  %v4355_v12 = vld [vmem:[#allocation56_spill] sm:$0xff] }
 0x49d   : > { %v4357_v15 = vpack.c.bf16 %v4355_v12, %v4356_v13 }
 0x49e   : > { %v2181_v22 = vmax.f32 %v2147_v47, 0.0  ;;  %v4358_v47 = vld [vmem:[#allocation40_spill] sm:$0xff] }
 0x49f   : > { %v4360_v35 = vpack.c.bf16 %v4358_v47, %v4359_v46 }
 0x4a0   : > { %v2201_v36 = vpack.c.bf16 %v2181_v22, %v2180_v19  ;;  %v4362_v19 = vld [vmem:[#allocation53_spill] sm:$0xff] }
 0x4a1   : > { %v4363_v22 = vpack.c.bf16 %v4361_v21, %v4362_v19 }
 0x4a2   : > { %2927 = vmatprep.subr.bf16.mxu1 %v2201_v36  ;;  %v4367_v36 = vld [vmem:[#allocation52_spill] sm:$0xff] }
 0x4a3   : > { %2928 = vmatpush3.bf16.msra.mxu1 %v4019_v14  ;;  %v2107_v14 = vadd.f32 %v2896_v28, %v3978_v56  ;;  %v3272_v56 = vld [vmem:[%s4000_s20] ss:$8 sps:$4 sm:$0xff]   ;;  %v4369_v5 = vpack.c.bf16 %v4367_v36, %v4368_v23  ;;  %v4375_v28 = vpack.c.bf16 %v4373_v31, %v4374_v25 }
 0x4a4   : > { %2929 = vmatprep.subr.bf16.mxu1 %v2200_v0  ;;  %v4371_v0 = vld [vmem:[#allocation35_spill] sm:$0xff] }
 0x4a5   : > { %v4372_v26 = vpack.c.bf16 %v4370_v1, %v4371_v0 }
 0x4a7   : > { %2930 = vmatpush3.bf16.msra.mxu1 %v4015_v60  ;;  %v2171_v60 = vmax.f32 %v2107_v14, 0.0 }
 0x4a8   : > { %2931 = vmatprep.subr.bf16.mxu1 %v2199_v52  ;;  %v4378_v52 = vpack.c.bf16 %v4376_v39, %v4377_v20 }
 0x4a9   : > { %v2196_v61 = vpack.c.bf16 %v2171_v60, %v2170_v33 }
 0x4ab   : > { %2932 = vmatpush3.bf16.msra.mxu1 %v4011_v37  ;;  %v3277_v37 = vld [vmem:[%s4000_s20 + $0x14] ss:$8 sps:$4 sm:$0xff]  }
 0x4ac   : > { %2933 = vmatprep.subr.bf16.mxu1 %v2198_v27 }
 0x4af   : > { %2934 = vmatpush3.bf16.msra.mxu1 %v4007_v30  ;;  %v4331_v30 = vld [vmem:[#allocation64_spill] sm:$0xff] }
 0x4b0   : > { %2935 = vmatprep.subr.bf16.mxu1 %v2197_v44  ;;  %v4333_v41 = vpack.c.bf16 %v4331_v30, %v4332_v48 }
 0x4b3   : > { %2936 = vmatpush3.bf16.msra.mxu1 %v4003_v32  ;;  %v4335_v32 = vld [vmem:[#allocation47_spill] sm:$0xff] }
 0x4b4   : > { %2937 = vmatprep.subr.bf16.mxu1 %v2196_v61  ;;  %v4336_v43 = vpack.c.bf16 %v4334_v42, %v4335_v32 }
 0x4b7   : > { %2938 = vmatpush3.bf16.msra.mxu1 %v3990_v24  ;;  %v4337_v24 = vld [vmem:[#allocation62_spill] sm:$0xff] }
 0x4b8   : > { %2939 = vmatprep.subr.bf16.mxu1 %v4036_v16  ;;  %v4338_v16 = vld [vmem:[#allocation61_spill] sm:$0xff] }
 0x4b9   : > { %v4339_v49 = vpack.c.bf16 %v4337_v24, %v4338_v16 }
 0x4bb   : > { %2940 = vmatpush3.bf16.msra.mxu1 %v3986_v8  ;;  %v3275_v8 = vld [vmem:[%s4000_s20 + $0x10] ss:$8 sps:$4 sm:$0xff]  }
 0x4bc   : > { %2941 = vmatprep.subr.bf16.mxu1 %v4023_v45  ;;  %v4340_v45 = vld [vmem:[#allocation46_spill] sm:$0xff] }
 0x4bd   : > { %v4342_v51 = vpack.c.bf16 %v4340_v45, %v4341_v50 }
 0x4bf   : > { %2942 = vmatpush3.bf16.msra.mxu1 %v3982_v53  ;;  %v4343_v53 = vld [vmem:[#allocation60_spill] sm:$0xff]  ;;  %v2278_v38 = vpop.permute.xlu0 %2277 }
 0x4c0   : > { %2955 = vmatprep.subr.bf16.mxu1 %v4333_v41  ;;  %v4345_v57 = vpack.c.bf16 %v4343_v53, %v4344_v55 }
 0x4c2   : > { %2255 = vmatmul.mubr.bf16.vlgmr.msra.gmra.mxu1 %v3272_v56 }
 0x4c3   : > { %2956 = vmatpush3.bf16.msra.mxu1 %v4336_v43  ;;  %2262 = vmatprep.mubr.bf16.mxu1 %v3277_v37  ;;  %v2283_v33 = vpop.permute.xlu0 %2282  ;;  %v2288_v37 = vpop.permute.xlu1 %2287 }
 0x4c4   : > { %2957 = vmatprep.subr.bf16.mxu1 %v4339_v49 }
 0x4c7   : > { %2958 = vmatpush3.bf16.msra.mxu1 %v4342_v51  ;;  %v2293_v24 = vpop.permute.xlu1 %2292 }
 0x4c8   : > { %2959 = vmatprep.subr.bf16.mxu1 %v4345_v57 }
 0x4ca   : > { %2263 = vmatmul.mubr.bf16.gmra.mxu1 %v3275_v8 }
 0x4cb   : > { %2960 = vmatpush3.bf16.msra.mxu1 %v4348_v62  ;;  %2347 = vmatprep.mubr.bf16.mxu1 %v3278_v63 }
 0x4cc   : > { %2961 = vmatprep.subr.bf16.mxu1 %v4351_v6 }
 0x4cf   : > { %2962 = vmatpush3.bf16.msra.mxu1 %v4354_v11 }
 0x4d0   : > { %2963 = vmatprep.subr.bf16.mxu1 %v4357_v15 }
 0x4d3   : > { %2964 = vmatpush3.bf16.msra.mxu1 %v4360_v35 }
 0x4d4   : > { %2965 = vmatprep.subr.bf16.mxu1 %v4363_v22 }
 0x4d7   : > { %2966 = vmatpush3.bf16.msra.mxu1 %v4366_v18 }
 0x4d8   : > { %2967 = vmatprep.subr.bf16.mxu1 %v4369_v5 }
 0x4db   : > { %2968 = vmatpush3.bf16.msra.mxu1 %v4372_v26 }
 0x4dc   : > { %2969 = vmatprep.subr.bf16.mxu1 %v4375_v28 }
 0x4df   : > { %2970 = vmatpush3.bf16.msra.mxu1 %v4378_v52 }
 0x4e2   : > { %2348 = vmatmul.mubr.bf16.vlgmr.msra.gmra.mxu1 %v3279_v29 }
 0x4e3   : > { %2355 = vmatprep.mubr.bf16.mxu1 %v3280_v17 }
 0x4ea   : > { %2356 = vmatmul.mubr.bf16.gmra.mxu1 %v3281_v54 }
 0x582   : > { %v2943_v14 = vpop.f32.mrf.mxu1 }
 0x584   : > { %v2944_v27 = vpop.f32.mrf.mxu1 }
 0x585   : > { %v2945_v7 = vadd.f32 %v2944_v27, %v2943_v14 }
 0x586   : > { %v2946_v4 = vpop.f32.mrf.mxu1 }
 0x587   : > { %v2295_v60 = vmul.f32 %v2945_v7, %v2278_v38 }
 0x588   : > { %v2947_v44 = vpop.f32.mrf.mxu1 }
 0x589   : > { %2364 = vst [vmem:[%s4129_s19] sm:$0xff] %v2295_v60  ;;  %v2948_v61 = vadd.f32 %v2947_v44, %v2946_v4 }
 0x58a   : > { %v2949_v56 = vpop.f32.mrf.mxu1 }
 0x58b   : > { %v2296_v30 = vmul.f32 %v2948_v61, %v2283_v33 }
 0x58c   : > { %v2950_v48 = vpop.f32.mrf.mxu1 }
 0x58d   : > { %2365 = vst [vmem:[%s4129_s19 + $0x10] sm:$0xff] %v2296_v30  ;;  %v2951_v41 = vadd.f32 %v2950_v48, %v2949_v56 }
 0x58e   : > { %v2952_v42 = vpop.f32.mrf.mxu1 }
 0x58f   : > { %v2297_v32 = vmul.f32 %v2951_v41, %v2288_v37 }
 0x590   : > { %v2953_v43 = vpop.f32.mrf.mxu1 }
 0x591   : > { %2366 = vst [vmem:[%s4129_s19 + $0x20] sm:$0xff] %v2297_v32  ;;  %v2954_v16 = vadd.f32 %v2953_v43, %v2952_v42 }
 0x593   : > { %v2298_v49 = vmul.f32 %v2954_v16, %v2293_v24 }
 0x595   : > { %2367 = vst [vmem:[%s4129_s19 + $0x30] sm:$0xff] %v2298_v49 }
 0x5a2   : > { %v2971_v8 = vpop.f32.mrf.mxu1 }
 0x5a4   : > { %v2972_v45 = vpop.f32.mrf.mxu1 }
 0x5a5   : > { %v2973_v50 = vadd.f32 %v2972_v45, %v2971_v8 }
 0x5a6   : > { %v2974_v51 = vpop.f32.mrf.mxu1 }
 0x5a7   : > { %2368 = vst [vmem:[%s4129_s19 + $0x8] sm:$0xff] %v2973_v50 }
 0x5a8   : > { %v2975_v53 = vpop.f32.mrf.mxu1 }
 0x5a9   : > { %v2976_v55 = vadd.f32 %v2975_v53, %v2974_v51 }
 0x5aa   : > { %v2977_v57 = vpop.f32.mrf.mxu1 }
 0x5ab   : > { %2369 = vst [vmem:[%s4129_s19 + $0x18] sm:$0xff] %v2976_v55 }
 0x5ac   : > { %v2978_v58 = vpop.f32.mrf.mxu1 }
 0x5ad   : > { %v2979_v59 = vadd.f32 %v2978_v58, %v2977_v57 }
 0x5ae   : > { %v2980_v62 = vpop.f32.mrf.mxu1 }
 0x5af   : > { %2370 = vst [vmem:[%s4129_s19 + $0x28] sm:$0xff] %v2979_v59 }
 0x5b0   : > { %v2981_v63 = vpop.f32.mrf.mxu1 }
 0x5b1   : > { %v2982_v2 = vadd.f32 %v2981_v63, %v2980_v62 }
 0x5b3   : > { %2371 = vst [vmem:[%s4129_s19 + $0x38] sm:$0xff] %v2982_v2 }
 0x5b4 PF: > { %s21_s17 = sadd.s32 1, %s3288_s17  }
 0x5b5   : > { %p18_p4 = scmp.ge.s32.totalorder %s21_s17, 4  }
 0x5b7   :  { %20 = sbr.rel (!%p18_p4) target bundleno = 1 (0x1), region = 103 }

</bundles_post_ra>
